<compile_context>
chip_gen: v6e
topology: v6e:2x2x1
jax: 0.10.0
libtpu: 0.0.40
codegen_flags: <defaults>
</compile_context>

<pallas_src>
import functools

import jax
import jax.numpy as jnp
from jax.experimental import pallas as pl
from jax.experimental.pallas import tpu as pltpu

LANES = 128  # lane width: pad output channels to a multiple of this


def _round_up(x, m):
    return ((x + m - 1) // m) * m


# ----------------------------- Pallas kernels ------------------------------

def conv1_matmul_stats_kernel(x_ref, w_ref, b_ref, y_ref, sum_ref, ssq_ref,
                              *, tm, m_valid):
    """y = clip(x @ w + b, 0, 6) (bf16 store); also emit per-grid-step partial
    per-channel sum / sum-of-squares of y (valid rows only) for BatchNorm."""
    i = pl.program_id(0)

    acc = jnp.dot(x_ref[...], w_ref[...], preferred_element_type=jnp.float32)
    y = jnp.clip(acc + b_ref[...], 0.0, 6.0)               # f32 (tm, Cp)
    y_ref[...] = y.astype(y_ref.dtype)

    # Mask rows that are only M-padding so they don't pollute the BN statistics.
    row = jax.lax.broadcasted_iota(jnp.int32, (tm, 1), 0) + i * tm
    ym = jnp.where(row < m_valid, y, 0.0)

    # Per-step partials in (8, Cp) sublane-friendly shape (reduced in wrapper).
    g = tm // 8
    cp = y.shape[1]
    sum_ref[...] = jnp.sum(ym.reshape(g, 8, cp), axis=0)[None]
    ssq_ref[...] = jnp.sum((ym * ym).reshape(g, 8, cp), axis=0)[None]


def matmul_bias_relu6_kernel(x_ref, w_ref, b_ref, o_ref):
    """o = clip(x @ w + b, 0, 6)."""
    acc = jnp.dot(x_ref[...], w_ref[...], preferred_element_type=jnp.float32)
    o_ref[...] = jnp.clip(acc + b_ref[...], 0.0, 6.0)


# ------------------------------- pallas_call wrappers -----------------------

def _conv1_call(patches, w_mat, b_mat, *, tm, m_valid):
    Mp, K = patches.shape
    Cp = w_mat.shape[1]
    grid = Mp // tm
    kern = functools.partial(conv1_matmul_stats_kernel, tm=tm, m_valid=m_valid)
    return pl.pallas_call(
        kern,
        out_shape=(
            jax.ShapeDtypeStruct((Mp, Cp), jnp.bfloat16),
            jax.ShapeDtypeStruct((grid, 8, Cp), jnp.float32),
            jax.ShapeDtypeStruct((grid, 8, Cp), jnp.float32),
        ),
        grid=(grid,),
        in_specs=[
            pl.BlockSpec((tm, K), lambda i: (i, 0)),
            pl.BlockSpec((K, Cp), lambda i: (0, 0)),
            pl.BlockSpec((1, Cp), lambda i: (0, 0)),
        ],
        out_specs=(
            pl.BlockSpec((tm, Cp), lambda i: (i, 0)),
            pl.BlockSpec((1, 8, Cp), lambda i: (i, 0, 0)),   # per-step partials
            pl.BlockSpec((1, 8, Cp), lambda i: (i, 0, 0)),
        ),
        compiler_params=pltpu.CompilerParams(
            dimension_semantics=("parallel",)),              # megacore on v7x
    )(patches, w_mat, b_mat)


def _conv2_call(patches, w_mat, b_mat, *, tm):
    Mp, K = patches.shape
    Cp = w_mat.shape[1]
    return pl.pallas_call(
        matmul_bias_relu6_kernel,
        out_shape=jax.ShapeDtypeStruct((Mp, Cp), jnp.float32),
        grid=(Mp // tm,),
        in_specs=[
            pl.BlockSpec((tm, K), lambda i: (i, 0)),
            pl.BlockSpec((K, Cp), lambda i: (0, 0)),
            pl.BlockSpec((1, Cp), lambda i: (0, 0)),
        ],
        out_specs=pl.BlockSpec((tm, Cp), lambda i: (i, 0)),
        compiler_params=pltpu.CompilerParams(
            dimension_semantics=("parallel",)),
    )(patches, w_mat, b_mat)


# ------------------------------- JAX glue -----------------------------------

def _im2col_from_padded(xp, H, W):
    """xp: (N, H+2, W+2, C) already padded -> (N*H*W, 9*C), tap order (kh, kw, c)."""
    N = xp.shape[0]
    C = xp.shape[-1]
    cols = []
    for di in range(3):
        for dj in range(3):
            cols.append(xp[:, di:di + H, dj:dj + W, :])
    return jnp.concatenate(cols, axis=-1).reshape(N * H * W, 9 * C)


def conv_block_forward(x_nchw, params, *, tm_target=1024):
    """Full conv_block forward. x: NCHW float32 -> NCHW float32."""
    eps = 1e-5
    x = jnp.transpose(x_nchw, (0, 2, 3, 1)).astype(jnp.bfloat16)   # NCHW -> NHWC
    N, H, W, Cin = x.shape
    out_ch = params["w1"].shape[0]
    Cp = _round_up(out_ch, LANES)          # lane-dense output channels
    M = N * H * W
    tm = min(tm_target, _round_up(M, 8))   # clamp: tiny problems -> 1 grid step
    Mp = _round_up(M, tm)

    # ---- conv1 (3x3, pad=1) + ReLU6, with fused BN batch-stats partials -----
    w1 = jnp.transpose(params["w1"], (2, 3, 1, 0))                 # (kh,kw,in,out)
    w1 = jnp.pad(w1, ((0, 0), (0, 0), (0, 0), (0, Cp - out_ch)))
    w1_mat = w1.reshape(9 * Cin, Cp).astype(jnp.bfloat16)
    b1 = jnp.pad(params["b1"], (0, Cp - out_ch)).reshape(1, Cp).astype(jnp.float32)

    xp = jnp.pad(x, ((0, 0), (1, 1), (1, 1), (0, 0)))
    p1 = _im2col_from_padded(xp, H, W)                             # (M, 9*Cin) bf16
    p1 = jnp.pad(p1, ((0, Mp - M), (0, 0)))                        # rows -> mult of tm

    y, psum, pssq = _conv1_call(p1, w1_mat, b1, tm=tm, m_valid=M)

    # ---- BatchNorm2d (training batch stats), folded exactly into conv2 ------
    sum_c = jnp.sum(psum, axis=(0, 1))[:out_ch]
    ssq_c = jnp.sum(pssq, axis=(0, 1))[:out_ch]
    mean = sum_c / M
    var = jnp.maximum(ssq_c / M - mean * mean, 0.0)                # biased variance
    gamma = params["gamma"].astype(jnp.float32)
    beta = params["beta"].astype(jnp.float32)
    scale = gamma * jax.lax.rsqrt(var + eps)                       # BN(y) = scale*y + shift
    shift = beta - mean * scale
    safe_scale = jnp.where(scale != 0.0, scale, 1.0)
    pad_val = jnp.where(scale != 0.0, -shift / safe_scale, 0.0)    # scale*pad_val + shift == 0
    # (if gamma==0 the zero-pad of BN(y) is not representable in y-space; the
    #  guard keeps it finite for that degenerate channel.)

    # conv2 weights with BN folded; contraction K = 9*out_ch (no channel padding)
    w2 = jnp.transpose(params["w2"], (2, 3, 1, 0))                 # (kh,kw,in,out)
    w2 = jnp.pad(w2, ((0, 0), (0, 0), (0, 0), (0, Cp - out_ch)))   # pad only cout
    w2_fold = (w2 * scale[None, None, :, None]).reshape(9 * out_ch, Cp).astype(jnp.bfloat16)
    b2_fold = (jnp.pad(params["b2"], (0, Cp - out_ch))
               + jnp.sum(w2 * shift[None, None, :, None], axis=(0, 1, 2))
               ).reshape(1, Cp).astype(jnp.float32)

    # ---- conv2 (3x3, pad=1) + ReLU6 -----------------------------------------
    y_nhwc = y[:M, :out_ch].reshape(N, H, W, out_ch)               # slice channel pad
    # Spatial pad with the per-channel value BN maps to zero (== zero-pad of BN(y)).
    yp = jnp.broadcast_to(pad_val.astype(jnp.bfloat16).reshape(1, 1, 1, out_ch),
                          (N, H + 2, W + 2, out_ch))
    yp = yp.at[:, 1:H + 1, 1:W + 1, :].set(y_nhwc)
    p2 = _im2col_from_padded(yp, H, W)                             # (M, 9*out_ch) bf16
    p2 = jnp.pad(p2, ((0, Mp - M), (0, 0)))

    y2 = _conv2_call(p2, w2_fold, b2_fold, tm=tm)

    out = y2[:M, :out_ch].reshape(N, H, W, out_ch)
    return jnp.transpose(out, (0, 3, 1, 2)).astype(x_nchw.dtype)   # NHWC -> NCHW


def init_params(key, in_ch, out_ch):
    k1, k2, k3, k4 = jax.random.split(key, 4)
    fan1 = in_ch * 9
    fan2 = out_ch * 9
    return {
        "w1": jax.random.normal(k1, (out_ch, in_ch, 3, 3), jnp.float32) / jnp.sqrt(fan1),
        "b1": jax.random.normal(k2, (out_ch,), jnp.float32) * 0.01,
        "gamma": jnp.ones((out_ch,), jnp.float32),
        "beta": jnp.zeros((out_ch,), jnp.float32),
        "w2": jax.random.normal(k3, (out_ch, out_ch, 3, 3), jnp.float32) / jnp.sqrt(fan2),
        "b2": jax.random.normal(k4, (out_ch,), jnp.float32) * 0.01,
    }


if __name__ == "__main__":
    key = jax.random.PRNGKey(0)
    kx, kp = jax.random.split(key)

    N, in_ch, out_ch, H, W = 2, 4, 8, 16, 16
    x = jax.random.normal(kx, (N, in_ch, H, W), jnp.float32)
    params = init_params(kp, in_ch, out_ch)

    y = jax.jit(conv_block_forward)(x, params)
    y = jax.block_until_ready(y)

    assert y.shape == (N, out_ch, H, W), y.shape
    assert bool(jnp.isfinite(y).all())
    print("KERNEL_OK")
</pallas_src>

<mosaic_0001>
module attributes {stable_mosaic.version = 11 : i64} {
  func.func @conv1_matmul_stats_kernel(%arg0: i32, %arg1: memref<512x36xbf16, #tpu.memory_space<vmem>>, %arg2: memref<36x128xbf16, #tpu.memory_space<vmem>>, %arg3: memref<1x128xf32, #tpu.memory_space<vmem>>, %arg4: memref<512x128xbf16, #tpu.memory_space<vmem>>, %arg5: memref<1x8x128xf32, #tpu.memory_space<vmem>>, %arg6: memref<1x8x128xf32, #tpu.memory_space<vmem>>) attributes {dimension_semantics = [#tpu.dimension_semantics<parallel>], iteration_bounds = array<i64: 1>, scalar_prefetch = 0 : i64, scratch_operands = 0 : i64, tpu.core_type = #tpu.core_type<tc>, window_params = [{transform_indices = @transform_0, window_bounds = array<i64: 512, 36>}, {pipeline_mode = #tpu.pipeline_mode<synchronous>, transform_indices = @transform_1, window_bounds = array<i64: 36, 128>}, {pipeline_mode = #tpu.pipeline_mode<synchronous>, transform_indices = @transform_2, window_bounds = array<i64: 1, 128>}, {transform_indices = @transform_3, window_bounds = array<i64: 512, 128>}, {transform_indices = @transform_4, window_bounds = array<i64: 1, 8, 128>}, {transform_indices = @transform_5, window_bounds = array<i64: 1, 8, 128>}]} {
    %c0 = arith.constant 0 : index
    %c0_0 = arith.constant 0 : index
    %0 = vector.load %arg1[%c0, %c0_0] : memref<512x36xbf16, #tpu.memory_space<vmem>>, vector<512x36xbf16>
    %c0_1 = arith.constant 0 : index
    %c0_2 = arith.constant 0 : index
    %1 = vector.load %arg2[%c0_1, %c0_2] : memref<36x128xbf16, #tpu.memory_space<vmem>>, vector<36x128xbf16>
    %cst = arith.constant dense<0.000000e+00> : vector<512x128xf32>
    %2 = tpu.matmul %0, %1, %cst {dimension_numbers = #tpu.dot_dimension_numbers<[1], [0], [0], [1], [0, 0, 1, 1], [], []>} : vector<512x36xbf16>, vector<36x128xbf16>, vector<512x128xf32> -> vector<512x128xf32>
    %c0_3 = arith.constant 0 : index
    %c0_4 = arith.constant 0 : index
    %3 = vector.load %arg3[%c0_3, %c0_4] : memref<1x128xf32, #tpu.memory_space<vmem>>, vector<1x128xf32>
    %4 = vector.broadcast %3 : vector<1x128xf32> to vector<512x128xf32>
    %5 = arith.addf %2, %4 : vector<512x128xf32>
    %cst_5 = arith.constant 0.000000e+00 : f32
    %cst_6 = arith.constant 6.000000e+00 : f32
    %6 = vector.broadcast %cst_5 : f32 to vector<512x128xf32>
    %7 = arith.maximumf %6, %5 : vector<512x128xf32>
    %8 = vector.broadcast %cst_6 : f32 to vector<512x128xf32>
    %9 = arith.minimumf %8, %7 : vector<512x128xf32>
    %10 = arith.truncf %9 : vector<512x128xf32> to vector<512x128xbf16>
    %c0_7 = arith.constant 0 : index
    %c0_8 = arith.constant 0 : index
    %11 = vector.load %arg4[%c0_7, %c0_8] : memref<512x128xbf16, #tpu.memory_space<vmem>>, vector<512x128xbf16>
    tpu.vector_store %arg4[%c0_7, %c0_8], %10 {strides = array<i32>} : memref<512x128xbf16, #tpu.memory_space<vmem>>, vector<512x128xbf16>,
    %12 = tpu.iota {dimensions = array<i32: 0>} : vector<512x1xi32>
    %c512_i32 = arith.constant 512 : i32
    %13 = arith.muli %arg0, %c512_i32 : i32
    %14 = vector.broadcast %13 : i32 to vector<512x1xi32>
    %15 = arith.addi %12, %14 : vector<512x1xi32>
    %c512_i32_9 = arith.constant 512 : i32
    %16 = vector.broadcast %c512_i32_9 : i32 to vector<512x1xi32>
    %17 = arith.cmpi slt, %15, %16 : vector<512x1xi32>
    %cst_10 = arith.constant 0.000000e+00 : f32
    %18 = vector.shape_cast %17 : vector<512x1xi1> to vector<512x1xi1>
    %19 = vector.broadcast %18 : vector<512x1xi1> to vector<512x128xi1>
    %20 = vector.broadcast %cst_10 : f32 to vector<512x128xf32>
    %21 = arith.select %19, %9, %20 : vector<512x128xi1>, vector<512x128xf32>
    %22 = vector.shape_cast %21 : vector<512x128xf32> to vector<64x8x128xf32>
    %cst_11 = arith.constant dense<0.000000e+00> : vector<8x128xf32>
    %23 = vector.multi_reduction <add>, %22, %cst_11 [0] : vector<64x8x128xf32> to vector<8x128xf32>
    %24 = vector.shape_cast %23 : vector<8x128xf32> to vector<1x8x128xf32>
    %c0_12 = arith.constant 0 : index
    %c0_13 = arith.constant 0 : index
    %c0_14 = arith.constant 0 : index
    %25 = vector.load %arg5[%c0_12, %c0_13, %c0_14] : memref<1x8x128xf32, #tpu.memory_space<vmem>>, vector<1x8x128xf32>
    tpu.vector_store %arg5[%c0_12, %c0_13, %c0_14], %24 {strides = array<i32>} : memref<1x8x128xf32, #tpu.memory_space<vmem>>, vector<1x8x128xf32>,
    %26 = arith.mulf %21, %21 : vector<512x128xf32>
    %27 = vector.shape_cast %26 : vector<512x128xf32> to vector<64x8x128xf32>
    %cst_15 = arith.constant dense<0.000000e+00> : vector<8x128xf32>
    %28 = vector.multi_reduction <add>, %27, %cst_15 [0] : vector<64x8x128xf32> to vector<8x128xf32>
    %29 = vector.shape_cast %28 : vector<8x128xf32> to vector<1x8x128xf32>
    %c0_16 = arith.constant 0 : index
    %c0_17 = arith.constant 0 : index
    %c0_18 = arith.constant 0 : index
    %30 = vector.load %arg6[%c0_16, %c0_17, %c0_18] : memref<1x8x128xf32, #tpu.memory_space<vmem>>, vector<1x8x128xf32>
    tpu.vector_store %arg6[%c0_16, %c0_17, %c0_18], %29 {strides = array<i32>} : memref<1x8x128xf32, #tpu.memory_space<vmem>>, vector<1x8x128xf32>,
    return
  }
  func.func @transform_0(%arg0: i32) -> (i32, i32) {
    %c0_i32 = arith.constant 0 : i32
    %c0_i32_0 = arith.constant 0 : i32
    return %arg0, %c0_i32 : i32, i32
  }
  func.func @transform_1(%arg0: i32) -> (i32, i32) {
    %c0_i32 = arith.constant 0 : i32
    %c0_i32_0 = arith.constant 0 : i32
    %c0_i32_1 = arith.constant 0 : i32
    return %c0_i32, %c0_i32_0 : i32, i32
  }
  func.func @transform_2(%arg0: i32) -> (i32, i32) {
    %c0_i32 = arith.constant 0 : i32
    %c0_i32_0 = arith.constant 0 : i32
    %c0_i32_1 = arith.constant 0 : i32
    return %c0_i32, %c0_i32_0 : i32, i32
  }
  func.func @transform_3(%arg0: i32) -> (i32, i32) {
    %c0_i32 = arith.constant 0 : i32
    %c0_i32_0 = arith.constant 0 : i32
    return %arg0, %c0_i32 : i32, i32
  }
  func.func @transform_4(%arg0: i32) -> (i32, i32, i32) {
    %c0_i32 = arith.constant 0 : i32
    %c0_i32_0 = arith.constant 0 : i32
    %c0_i32_1 = arith.constant 0 : i32
    return %arg0, %c0_i32, %c0_i32_0 : i32, i32, i32
  }
  func.func @transform_5(%arg0: i32) -> (i32, i32, i32) {
    %c0_i32 = arith.constant 0 : i32
    %c0_i32_0 = arith.constant 0 : i32
    %c0_i32_1 = arith.constant 0 : i32
    return %arg0, %c0_i32, %c0_i32_0 : i32, i32, i32
  }
}

module attributes {stable_mosaic.version = 11 : i64} {
  func.func @matmul_bias_relu6_kernel(%arg0: i32, %arg1: memref<512x72xbf16, #tpu.memory_space<vmem>>, %arg2: memref<72x128xbf16, #tpu.memory_space<vmem>>, %arg3: memref<1x128xf32, #tpu.memory_space<vmem>>, %arg4: memref<512x128xf32, #tpu.memory_space<vmem>>) attributes {dimension_semantics = [#tpu.dimension_semantics<parallel>], iteration_bounds = array<i64: 1>, scalar_prefetch = 0 : i64, scratch_operands = 0 : i64, tpu.core_type = #tpu.core_type<tc>, window_params = [{transform_indices = @transform_0, window_bounds = array<i64: 512, 72>}, {pipeline_mode = #tpu.pipeline_mode<synchronous>, transform_indices = @transform_1, window_bounds = array<i64: 72, 128>}, {pipeline_mode = #tpu.pipeline_mode<synchronous>, transform_indices = @transform_2, window_bounds = array<i64: 1, 128>}, {transform_indices = @transform_3, window_bounds = array<i64: 512, 128>}]} {
    %c0 = arith.constant 0 : index
    %c0_0 = arith.constant 0 : index
    %0 = vector.load %arg1[%c0, %c0_0] : memref<512x72xbf16, #tpu.memory_space<vmem>>, vector<512x72xbf16>
    %c0_1 = arith.constant 0 : index
    %c0_2 = arith.constant 0 : index
    %1 = vector.load %arg2[%c0_1, %c0_2] : memref<72x128xbf16, #tpu.memory_space<vmem>>, vector<72x128xbf16>
    %cst = arith.constant dense<0.000000e+00> : vector<512x128xf32>
    %2 = tpu.matmul %0, %1, %cst {dimension_numbers = #tpu.dot_dimension_numbers<[1], [0], [0], [1], [0, 0, 1, 1], [], []>} : vector<512x72xbf16>, vector<72x128xbf16>, vector<512x128xf32> -> vector<512x128xf32>
    %c0_3 = arith.constant 0 : index
    %c0_4 = arith.constant 0 : index
    %3 = vector.load %arg3[%c0_3, %c0_4] : memref<1x128xf32, #tpu.memory_space<vmem>>, vector<1x128xf32>
    %4 = vector.broadcast %3 : vector<1x128xf32> to vector<512x128xf32>
    %5 = arith.addf %2, %4 : vector<512x128xf32>
    %cst_5 = arith.constant 0.000000e+00 : f32
    %cst_6 = arith.constant 6.000000e+00 : f32
    %6 = vector.broadcast %cst_5 : f32 to vector<512x128xf32>
    %7 = arith.maximumf %6, %5 : vector<512x128xf32>
    %8 = vector.broadcast %cst_6 : f32 to vector<512x128xf32>
    %9 = arith.minimumf %8, %7 : vector<512x128xf32>
    %c0_7 = arith.constant 0 : index
    %c0_8 = arith.constant 0 : index
    %10 = vector.load %arg4[%c0_7, %c0_8] : memref<512x128xf32, #tpu.memory_space<vmem>>, vector<512x128xf32>
    tpu.vector_store %arg4[%c0_7, %c0_8], %9 {strides = array<i32>} : memref<512x128xf32, #tpu.memory_space<vmem>>, vector<512x128xf32>,
    return
  }
  func.func @transform_0(%arg0: i32) -> (i32, i32) {
    %c0_i32 = arith.constant 0 : i32
    %c0_i32_0 = arith.constant 0 : i32
    return %arg0, %c0_i32 : i32, i32
  }
  func.func @transform_1(%arg0: i32) -> (i32, i32) {
    %c0_i32 = arith.constant 0 : i32
    %c0_i32_0 = arith.constant 0 : i32
    %c0_i32_1 = arith.constant 0 : i32
    return %c0_i32, %c0_i32_0 : i32, i32
  }
  func.func @transform_2(%arg0: i32) -> (i32, i32) {
    %c0_i32 = arith.constant 0 : i32
    %c0_i32_0 = arith.constant 0 : i32
    %c0_i32_1 = arith.constant 0 : i32
    return %c0_i32, %c0_i32_0 : i32, i32
  }
  func.func @transform_3(%arg0: i32) -> (i32, i32) {
    %c0_i32 = arith.constant 0 : i32
    %c0_i32_0 = arith.constant 0 : i32
    return %arg0, %c0_i32 : i32, i32
  }
}

</mosaic_0001>

<bundles_post_ra>
// kernel: conv_block_forward.2
= control target key start
LH: loop header
LB: loop body
LE: loop exit
PB: predicated region body
PF: predicated region fallthrough
CT: control target
= control target key end

     0   :  { %vm366_vm0 = vcmask 1041408   ;;  %vm269_vm1 = vcmask 293888   ;;  %s2814_s1 = inlined_call_operand.vmem [shape: bf16[36,128], index: 1, kind: input, shape index: {}]   ;;  %s2815_s0 = inlined_call_operand.vmem [shape: bf16[512,36], index: 0, kind: input, shape index: {}]   ;;  %s2816_s2 = inlined_call_operand.vmem [shape: f32[1,128], index: 2, kind: input, shape index: {}]   ;;  %s2817_s3 = inlined_call_operand.vmem [shape: bf16[512,128], index: 3, kind: output, shape index: {0}]   ;;  %s2818_s4 = inlined_call_operand.vmem [shape: f32[1,8,128], index: 4, kind: output, shape index: {1}]   ;;  %s2819_s5 = inlined_call_operand.vmem [shape: f32[1,8,128], index: 5, kind: output, shape index: {2}]  }
   0x1   :  { %v2198_v0 = vld [vmem:[%s2814_s1 + $0x10] ss:$0 sps:$4 sm:$0x33]   ;;  %v2199_v1 = vld [vmem:[%s2814_s1 + $0x8] sm:$0xff]   ;;  %v2201_v3 = vld [vmem:[%s2815_s0] sm:$0xff]  }
   0x2   :  { %2196 = vmatprep.subr.msk.bf16.mxu0 %vm366_vm0, %v2198_v0  ;;  %v368_v2 = vsel %vm366_vm0, %v2198_v0, 0  ;;  %2197 = vmatprep.subr.msk.bf16.mxu1 %vm366_vm0, %v2198_v0  ;;  %v2200_v4 = vld [vmem:[%s2814_s1] sm:$0xff]   ;;  %v2202_v5 = vld [vmem:[%s2815_s0 + $0x8] sm:$0xff]   ;;  %v2203_v6 = vld [vmem:[%s2815_s0 + $0x10] sm:$0xff]  }
   0x3   :  { %2121 = vmatpush3.bf16.msra.mxu0 %v368_v2  ;;  %2193 = vmatpush3.bf16.msra.mxu1 %v368_v2  ;;  %v2204_v7 = vld [vmem:[%s2815_s0 + $0x18] sm:$0xff]   ;;  %v2205_v8 = vld [vmem:[%s2815_s0 + $0x20] sm:$0xff]   ;;  %v2218_v10 = vld [vmem:[%s2815_s0 + $0x88] sm:$0xff]  }
   0x4   :  { %2122 = vmatprep.subr.bf16.mxu0 %v2199_v1  ;;  %2191 = vmatprep.subr.bf16.mxu1 %v2199_v1  ;;  %v2217_v9 = vld [vmem:[%s2815_s0 + $0x80] sm:$0xff]   ;;  %v2219_v11 = vld [vmem:[%s2815_s0 + $0x90] sm:$0xff]   ;;  %v2206_v12 = vld [vmem:[%s2815_s0 + $0x28] sm:$0xff]  }
   0x5   :  { %2126 = vmatprep.mubr.msk.bf16.mxu0 %vm269_vm1, %v2201_v3  ;;  %2158 = vmatprep.mubr.msk.bf16.mxu1 %vm269_vm1, %v2217_v9  ;;  %v2207_v13 = vld [vmem:[%s2815_s0 + $0x30] sm:$0xff]   ;;  %v2220_v14 = vld [vmem:[%s2815_s0 + $0x98] sm:$0xff]   ;;  %v2221_v15 = vld [vmem:[%s2815_s0 + $0xa0] sm:$0xff]  }
   0x6   :  { %v2208_v16 = vld [vmem:[%s2815_s0 + $0x38] sm:$0xff]   ;;  %v2222_v17 = vld [vmem:[%s2815_s0 + $0xa8] sm:$0xff]   ;;  %v2209_v18 = vld [vmem:[%s2815_s0 + $0x40] sm:$0xff]  }
   0x7   :  { %2123 = vmatpush3.bf16.msra.mxu0 %v2199_v1  ;;  %2194 = vmatpush3.bf16.msra.mxu1 %v2199_v1  ;;  %v2223_v19 = vld [vmem:[%s2815_s0 + $0xb0] sm:$0xff]   ;;  %v2210_v20 = vld [vmem:[%s2815_s0 + $0x48] sm:$0xff]   ;;  %v2224_v21 = vld [vmem:[%s2815_s0 + $0xb8] sm:$0xff]  }
   0x8   :  { %2124 = vmatprep.subr.bf16.mxu0 %v2200_v4  ;;  %2192 = vmatprep.subr.bf16.mxu1 %v2200_v4  ;;  %v2211_v22 = vld [vmem:[%s2815_s0 + $0x50] sm:$0xff]   ;;  %v2225_v23 = vld [vmem:[%s2815_s0 + $0xc0] sm:$0xff]   ;;  %v2212_v24 = vld [vmem:[%s2815_s0 + $0x58] sm:$0xff]  }
   0x9   :  { %v2226_v25 = vld [vmem:[%s2815_s0 + $0xc8] sm:$0xff]   ;;  %v2213_v26 = vld [vmem:[%s2815_s0 + $0x60] sm:$0xff]   ;;  %v2227_v27 = vld [vmem:[%s2815_s0 + $0xd0] sm:$0xff]  }
   0xa   :  { %v2214_v28 = vld [vmem:[%s2815_s0 + $0x68] sm:$0xff]   ;;  %v2228_v29 = vld [vmem:[%s2815_s0 + $0xd8] sm:$0xff]   ;;  %v2215_v30 = vld [vmem:[%s2815_s0 + $0x70] sm:$0xff]  }
   0xb   :  { %2125 = vmatpush3.bf16.msra.mxu0 %v2200_v4  ;;  %2195 = vmatpush3.bf16.msra.mxu1 %v2200_v4  ;;  %v2229_v31 = vld [vmem:[%s2815_s0 + $0xe0] sm:$0xff]   ;;  %v2216_v32 = vld [vmem:[%s2815_s0 + $0x78] sm:$0xff]   ;;  %v2230_v33 = vld [vmem:[%s2815_s0 + $0xe8] sm:$0xff]  }
   0xc   :  { %v2231_v34 = vld [vmem:[%s2815_s0 + $0xf0] sm:$0xff]   ;;  %v2232_v35 = vld [vmem:[%s2815_s0 + $0xf8] sm:$0xff]   ;;  %v2403_v36 = vld [vmem:[%s2816_s2] ss:$0 sm:$0xff] }
   0xe   :  { %2127 = vmatmul.mubr.msk.bf16.vlgmr.msra.gmra.mxu0 %vm269_vm1, %v2202_v5  ;;  %2159 = vmatmul.mubr.msk.bf16.vlgmr.msra.gmra.mxu1 %vm269_vm1, %v2218_v10 }
   0xf   :  { %2130 = vmatprep.mubr.msk.bf16.mxu0 %vm269_vm1, %v2203_v6  ;;  %2162 = vmatprep.mubr.msk.bf16.mxu1 %vm269_vm1, %v2219_v11 }
  0x16   :  { %2131 = vmatmul.mubr.msk.bf16.gmra.mxu0 %vm269_vm1, %v2204_v7  ;;  %2163 = vmatmul.mubr.msk.bf16.gmra.mxu1 %vm269_vm1, %v2220_v14 }
  0x17   :  { %2134 = vmatprep.mubr.msk.bf16.mxu0 %vm269_vm1, %v2205_v8  ;;  %2166 = vmatprep.mubr.msk.bf16.mxu1 %vm269_vm1, %v2221_v15 }
  0x1e   :  { %2135 = vmatmul.mubr.msk.bf16.gmra.mxu0 %vm269_vm1, %v2206_v12  ;;  %2167 = vmatmul.mubr.msk.bf16.gmra.mxu1 %vm269_vm1, %v2222_v17 }
  0x1f   :  { %2138 = vmatprep.mubr.msk.bf16.mxu0 %vm269_vm1, %v2207_v13  ;;  %2170 = vmatprep.mubr.msk.bf16.mxu1 %vm269_vm1, %v2223_v19 }
  0x26   :  { %2139 = vmatmul.mubr.msk.bf16.gmra.mxu0 %vm269_vm1, %v2208_v16  ;;  %2171 = vmatmul.mubr.msk.bf16.gmra.mxu1 %vm269_vm1, %v2224_v21 }
  0x27   :  { %2142 = vmatprep.mubr.msk.bf16.mxu0 %vm269_vm1, %v2209_v18  ;;  %2174 = vmatprep.mubr.msk.bf16.mxu1 %vm269_vm1, %v2225_v23 }
  0x2e   :  { %2143 = vmatmul.mubr.msk.bf16.gmra.mxu0 %vm269_vm1, %v2210_v20  ;;  %2175 = vmatmul.mubr.msk.bf16.gmra.mxu1 %vm269_vm1, %v2226_v25 }
  0x2f   :  { %2146 = vmatprep.mubr.msk.bf16.mxu0 %vm269_vm1, %v2211_v22  ;;  %2178 = vmatprep.mubr.msk.bf16.mxu1 %vm269_vm1, %v2227_v27 }
  0x36   :  { %2147 = vmatmul.mubr.msk.bf16.gmra.mxu0 %vm269_vm1, %v2212_v24  ;;  %2179 = vmatmul.mubr.msk.bf16.gmra.mxu1 %vm269_vm1, %v2228_v29 }
  0x37   :  { %2150 = vmatprep.mubr.msk.bf16.mxu0 %vm269_vm1, %v2213_v26  ;;  %2182 = vmatprep.mubr.msk.bf16.mxu1 %vm269_vm1, %v2229_v31 }
  0x3e   :  { %2151 = vmatmul.mubr.msk.bf16.gmra.mxu0 %vm269_vm1, %v2214_v28  ;;  %2183 = vmatmul.mubr.msk.bf16.gmra.mxu1 %vm269_vm1, %v2230_v33 }
  0x3f   :  { %2154 = vmatprep.mubr.msk.bf16.mxu0 %vm269_vm1, %v2215_v30  ;;  %2186 = vmatprep.mubr.msk.bf16.mxu1 %vm269_vm1, %v2231_v34 }
  0x46   :  { %2155 = vmatmul.mubr.msk.bf16.gmra.mxu0 %vm269_vm1, %v2216_v32  ;;  %2187 = vmatmul.mubr.msk.bf16.gmra.mxu1 %vm269_vm1, %v2232_v35 }
  0xce   :  { %v2128_v37 = vpop.f32.mrf.mxu0  ;;  %v2160_v50 = vpop.f32.mrf.mxu1 }
  0xcf   :  { %v413_v38 = vadd.f32 %v2128_v37, %v2403_v36  ;;  %v541_v56 = vadd.f32 %v2160_v50, %v2403_v36 }
  0xd0   :  { %v404_v39 = vpop.f32.mrf.mxu0  ;;  %v532_v57 = vpop.f32.mrf.mxu1 }
  0xd1   :  { %v405_v40 = vadd.f32 %v2403_v36, %v404_v39  ;;  %v661_v42 = vmax.f32 %v413_v38, 0.0  ;;  %v693_v4 = vmax.f32 %v541_v56, 0.0  ;;  %v533_v8 = vadd.f32 %v2403_v36, %v532_v57 }
  0xd2   :  { %v2129_v41 = vpop.f32.mrf.mxu0  ;;  %v2161_v0 = vpop.f32.mrf.mxu1 }
  0xd3   :  { %v659_v43 = vmax.f32 %v405_v40, 0.0  ;;  %v416_v44 = vadd.f32 %v2129_v41, %v2403_v36  ;;  %v725_v51 = vmin.f32 %v661_v42, 6.0  ;;  %v2423_v23 = vmin.f32 %v693_v4, 6.0 }
  0xd4   :  { %v407_v45 = vpop.f32.mrf.mxu0  ;;  %v535_v9 = vpop.f32.mrf.mxu1  ;;  %v691_v27 = vmax.f32 %v533_v8, 0.0  ;;  %v544_v28 = vadd.f32 %v2161_v0, %v2403_v36 }
  0xd5   :  { %v662_v46 = vmax.f32 %v416_v44, 0.0  ;;  %v408_v47 = vadd.f32 %v2403_v36, %v407_v45  ;;  %v723_v48 = vmin.f32 %v659_v43, 6.0  ;;  %v1560_v10 = vmul.f32 %v725_v51, %v725_v51 }
  0xd6   :  { %v2132_v49 = vpop.f32.mrf.mxu0  ;;  %v2421_v19 = vpop.f32.mrf.mxu1  ;;  %v694_v39 = vmax.f32 %v544_v28, 0.0 }
  0xd7   :  { %v726_v52 = vmin.f32 %v662_v46, 6.0  ;;  %v660_v53 = vmax.f32 %v408_v47, 0.0  ;;  %v429_v54 = vadd.f32 %v2132_v49, %v2403_v36  ;;  %v1558_v60 = vmul.f32 %v723_v48, %v723_v48 }
  0xd8   :  { %v420_v55 = vpop.f32.mrf.mxu0  ;;  %v2427_v29 = vpop.f32.mrf.mxu1  ;;  %v2436_v49 = vmin.f32 %v694_v39, 6.0 }
  0xd9   :  { %v1902_v58 = vpack.c.bf16 %v726_v52, %v725_v51  ;;  %v724_v59 = vmin.f32 %v660_v53, 6.0  ;;  %v665_v61 = vmax.f32 %v429_v54, 0.0  ;;  %v421_v62 = vadd.f32 %v2403_v36, %v420_v55 }
  0xda   :  { %v2133_v63 = vpop.f32.mrf.mxu0  ;;  %v1561_v14 = vmul.f32 %v726_v52, %v726_v52  ;;  %v2430_v40 = vpop.f32.mrf.mxu1  ;;  %v536_v54 = vadd.f32 %v2403_v36, %v535_v9 }
  0xdb   :  { %2054 = vst [vmem:[%s2817_s3 + $0x8] sm:$0xff] %v1902_v58   ;;  %v1897_v1 = vpack.c.bf16 %v724_v59, %v723_v48  ;;  %v1494_v2 = vadd.f32 %v724_v59, %v723_v48  ;;  %v1559_v3 = vmul.f32 %v724_v59, %v724_v59  ;;  %v663_v5 = vmax.f32 %v421_v62, 0.0 }
  0xdc   :  { %v432_v6 = vadd.f32 %v2133_v63, %v2403_v36  ;;  %v423_v7 = vpop.f32.mrf.mxu0  ;;  %v729_v15 = vmin.f32 %v665_v61, 6.0  ;;  %v2438_v50 = vpop.f32.mrf.mxu1  ;;  %v2445_v58 = vmin.f32 %v691_v27, 6.0  ;;  %v1982_v59 = vpack.c.bf16 %v2436_v49, %v2423_v23 }
  0xdd   :  { %1898 = vst [vmem:[%s2817_s3] sm:$0xff] %v1897_v1   ;;  %v1495_v11 = vadd.f32 %v1494_v2, %v725_v51  ;;  %v1622_v12 = vadd.f32 %v1559_v3, %v1558_v60  ;;  %v424_v13 = vadd.f32 %v2403_v36, %v423_v7  ;;  %v727_v16 = vmin.f32 %v663_v5, 6.0 }
  0xde   :  { %v666_v17 = vmax.f32 %v432_v6, 0.0  ;;  %v2136_v18 = vpop.f32.mrf.mxu0  ;;  %v1564_v34 = vmul.f32 %v729_v15, %v729_v15  ;;  %v2449_v60 = vpop.f32.mrf.mxu1  ;;  %2070 = vst [vmem:[%s2817_s3 + $0x88] sm:$0xff] %v1982_v59   ;;  %v692_v5 = vmax.f32 %v536_v54, 0.0 }
  0xdf   :  { %v1623_v20 = vadd.f32 %v1622_v12, %v1560_v10  ;;  %v1496_v21 = vadd.f32 %v1495_v11, %v726_v52  ;;  %v664_v22 = vmax.f32 %v424_v13, 0.0  ;;  %v445_v25 = vadd.f32 %v2136_v18, %v2403_v36 }
  0xe0   :  { %v730_v24 = vmin.f32 %v666_v17, 6.0  ;;  %v436_v26 = vpop.f32.mrf.mxu0  ;;  %v1562_v31 = vmul.f32 %v727_v16, %v727_v16  ;;  %v2455_v6 = vpop.f32.mrf.mxu1 }
  0xe1   :  { %v1497_v30 = vadd.f32 %v1496_v21, %v727_v16  ;;  %v1624_v32 = vadd.f32 %v1623_v20, %v1561_v14  ;;  %v728_v33 = vmin.f32 %v664_v22, 6.0  ;;  %v437_v37 = vadd.f32 %v2403_v36, %v436_v26 }
  0xe2   :  { %v1912_v35 = vpack.c.bf16 %v730_v24, %v729_v15  ;;  %v2137_v38 = vpop.f32.mrf.mxu0  ;;  %v669_v45 = vmax.f32 %v445_v25, 0.0  ;;  %v1565_v61 = vmul.f32 %v730_v24, %v730_v24  ;;  %v2458_v14 = vmin.f32 %v692_v5, 6.0 }
  0xe3   :  { %v1625_v41 = vadd.f32 %v1624_v32, %v1562_v31  ;;  %v1907_v42 = vpack.c.bf16 %v728_v33, %v727_v16  ;;  %v1498_v43 = vadd.f32 %v1497_v30, %v728_v33  ;;  %v1563_v44 = vmul.f32 %v728_v33, %v728_v33 }
  0xe4   :  { %2056 = vst [vmem:[%s2817_s3 + $0x18] sm:$0xff] %v1912_v35   ;;  %v667_v46 = vmax.f32 %v437_v37, 0.0  ;;  %v448_v47 = vadd.f32 %v2137_v38, %v2403_v36  ;;  %v439_v48 = vpop.f32.mrf.mxu0  ;;  %v733_v1 = vmin.f32 %v669_v45, 6.0  ;;  %v1977_v26 = vpack.c.bf16 %v2458_v14, %v2445_v58 }
  0xe5   :  { %2055 = vst [vmem:[%s2817_s3 + $0x10] sm:$0xff] %v1907_v42   ;;  %v1499_v51 = vadd.f32 %v1498_v43, %v729_v15  ;;  %v1626_v52 = vadd.f32 %v1625_v41, %v1563_v44  ;;  %v440_v53 = vadd.f32 %v2403_v36, %v439_v48  ;;  %v2460_v15 = vpop.f32.mrf.mxu1 }
  0xe6   :  { %v731_v55 = vmin.f32 %v667_v46, 6.0  ;;  %v670_v56 = vmax.f32 %v448_v47, 0.0  ;;  %v2140_v57 = vpop.f32.mrf.mxu0  ;;  %v1568_v28 = vmul.f32 %v733_v1, %v733_v1  ;;  %2069 = vst [vmem:[%s2817_s3 + $0x80] sm:$0xff] %v1977_v26   ;;  %v557_v47 = vadd.f32 %v2421_v19, %v2403_v36 }
  0xe7   :  { %v1627_v62 = vadd.f32 %v1626_v52, %v1564_v34  ;;  %v1500_v63 = vadd.f32 %v1499_v51, %v730_v24  ;;  %v668_v0 = vmax.f32 %v440_v53, 0.0  ;;  %v461_v3 = vadd.f32 %v2140_v57, %v2403_v36  ;;  %v2468_v27 = vpop.f32.mrf.mxu1 }
  0xe8   :  { %v734_v2 = vmin.f32 %v670_v56, 6.0  ;;  %v452_v4 = vpop.f32.mrf.mxu0  ;;  %v1566_v8 = vmul.f32 %v731_v55, %v731_v55  ;;  %v697_v5 = vmax.f32 %v557_v47, 0.0 }
  0xe9   :  { %v1501_v7 = vadd.f32 %v1500_v63, %v731_v55  ;;  %v1628_v9 = vadd.f32 %v1627_v62, %v1565_v61  ;;  %v732_v10 = vmin.f32 %v668_v0, 6.0  ;;  %v453_v12 = vadd.f32 %v2403_v36, %v452_v4  ;;  %v2477_v38 = vpop.f32.mrf.mxu1 }
  0xea   :  { %v1922_v11 = vpack.c.bf16 %v734_v2, %v733_v1  ;;  %v2141_v13 = vpop.f32.mrf.mxu0  ;;  %v673_v21 = vmax.f32 %v461_v3, 0.0  ;;  %v1569_v33 = vmul.f32 %v734_v2, %v734_v2 }
  0xeb   :  { %v1629_v16 = vadd.f32 %v1628_v9, %v1566_v8  ;;  %v1917_v17 = vpack.c.bf16 %v732_v10, %v731_v55  ;;  %v1502_v18 = vadd.f32 %v1501_v7, %v732_v10  ;;  %v1567_v20 = vmul.f32 %v732_v10, %v732_v10  ;;  %v2482_v48 = vpop.f32.mrf.mxu1 }
  0xec   :  { %2058 = vst [vmem:[%s2817_s3 + $0x28] sm:$0xff] %v1922_v11   ;;  %v671_v22 = vmax.f32 %v453_v12, 0.0  ;;  %v464_v24 = vadd.f32 %v2141_v13, %v2403_v36  ;;  %v455_v25 = vpop.f32.mrf.mxu0  ;;  %v737_v44 = vmin.f32 %v673_v21, 6.0  ;;  %v549_v11 = vadd.f32 %v2403_v36, %v2427_v29 }
  0xed   :  { %2057 = vst [vmem:[%s2817_s3 + $0x20] sm:$0xff] %v1917_v17   ;;  %v1503_v30 = vadd.f32 %v1502_v18, %v733_v1  ;;  %v1630_v31 = vadd.f32 %v1629_v16, %v1567_v20  ;;  %v456_v32 = vadd.f32 %v2403_v36, %v455_v25  ;;  %v2485_v61 = vpop.f32.mrf.mxu1  ;;  %v560_v18 = vadd.f32 %v2430_v40, %v2403_v36 }
  0xee   :  { %v735_v34 = vmin.f32 %v671_v22, 6.0  ;;  %v674_v35 = vmax.f32 %v464_v24, 0.0  ;;  %v2144_v37 = vpop.f32.mrf.mxu0 }
  0xef   :  { %v1631_v39 = vadd.f32 %v1630_v31, %v1568_v28  ;;  %v1504_v41 = vadd.f32 %v1503_v30, %v734_v2  ;;  %v672_v42 = vmax.f32 %v456_v32, 0.0  ;;  %v477_v43 = vadd.f32 %v2144_v37, %v2403_v36  ;;  %v2491_v7 = vpop.f32.mrf.mxu1 }
  0xf0   :  { %v738_v45 = vmin.f32 %v674_v35, 6.0  ;;  %v468_v46 = vpop.f32.mrf.mxu0  ;;  %v1570_v52 = vmul.f32 %v735_v34, %v735_v34  ;;  %v1572_v2 = vmul.f32 %v737_v44, %v737_v44  ;;  %v2504_v31 = vmin.f32 %v697_v5, 6.0 }
  0xf1   :  { %v1505_v51 = vadd.f32 %v1504_v41, %v735_v34  ;;  %v1632_v53 = vadd.f32 %v1631_v39, %v1569_v33  ;;  %v736_v54 = vmin.f32 %v672_v42, 6.0  ;;  %v677_v56 = vmax.f32 %v477_v43, 0.0  ;;  %v2501_v20 = vpop.f32.mrf.mxu1 }
  0xf2   :  { %v1932_v55 = vpack.c.bf16 %v738_v45, %v737_v44  ;;  %v469_v57 = vadd.f32 %v2403_v36, %v468_v46  ;;  %v2145_v59 = vpop.f32.mrf.mxu0  ;;  %v1573_v21 = vmul.f32 %v738_v45, %v738_v45  ;;  %v698_v29 = vmax.f32 %v560_v18, 0.0 }
  0xf3   :  { %v1633_v62 = vadd.f32 %v1632_v53, %v1570_v52  ;;  %v1927_v63 = vpack.c.bf16 %v736_v54, %v735_v34  ;;  %v1506_v0 = vadd.f32 %v1505_v51, %v736_v54  ;;  %v1571_v1 = vmul.f32 %v736_v54, %v736_v54  ;;  %v2506_v32 = vpop.f32.mrf.mxu1 }
  0xf4   :  { %2060 = vst [vmem:[%s2817_s3 + $0x38] sm:$0xff] %v1932_v55   ;;  %v675_v19 = vmax.f32 %v469_v57, 0.0  ;;  %v480_v3 = vadd.f32 %v2145_v59, %v2403_v36  ;;  %v471_v4 = vpop.f32.mrf.mxu0  ;;  %v741_v12 = vmin.f32 %v677_v56, 6.0  ;;  %v695_v43 = vmax.f32 %v549_v11, 0.0 }
  0xf5   :  { %2059 = vst [vmem:[%s2817_s3 + $0x30] sm:$0xff] %v1927_v63   ;;  %v1507_v8 = vadd.f32 %v1506_v0, %v737_v44  ;;  %v1634_v9 = vadd.f32 %v1633_v62, %v1571_v1  ;;  %v472_v10 = vadd.f32 %v2403_v36, %v471_v4  ;;  %v2509_v44 = vpop.f32.mrf.mxu1  ;;  %v2515_v56 = vmin.f32 %v698_v29, 6.0 }
  0xf6   :  { %v739_v13 = vmin.f32 %v675_v19, 6.0  ;;  %v678_v16 = vmax.f32 %v480_v3, 0.0  ;;  %v2148_v17 = vpop.f32.mrf.mxu0  ;;  %v1576_v40 = vmul.f32 %v741_v12, %v741_v12  ;;  %v552_v0 = vadd.f32 %v2403_v36, %v2438_v50 }
  0xf7   :  { %v1635_v22 = vadd.f32 %v1634_v9, %v1572_v2  ;;  %v1508_v24 = vadd.f32 %v1507_v8, %v738_v45  ;;  %v676_v25 = vmax.f32 %v472_v10, 0.0  ;;  %v493_v28 = vadd.f32 %v2148_v17, %v2403_v36  ;;  %v2517_v57 = vpop.f32.mrf.mxu1 }
  0xf8   :  { %v742_v26 = vmin.f32 %v678_v16, 6.0  ;;  %v484_v30 = vpop.f32.mrf.mxu0  ;;  %v1574_v34 = vmul.f32 %v739_v13, %v739_v13  ;;  %v2525_v3 = vmin.f32 %v695_v43, 6.0  ;;  %v1992_v4 = vpack.c.bf16 %v2515_v56, %v2504_v31 }
  0xf9   :  { %v1509_v33 = vadd.f32 %v1508_v24, %v739_v13  ;;  %v1636_v35 = vadd.f32 %v1635_v22, %v1573_v21  ;;  %v740_v37 = vmin.f32 %v676_v25, 6.0  ;;  %v485_v41 = vadd.f32 %v2403_v36, %v484_v30  ;;  %v2533_v17 = vpop.f32.mrf.mxu1 }
  0xfa   :  { %v1942_v39 = vpack.c.bf16 %v742_v26, %v741_v12  ;;  %v2149_v42 = vpop.f32.mrf.mxu0  ;;  %v681_v52 = vmax.f32 %v493_v28, 0.0  ;;  %v1577_v5 = vmul.f32 %v742_v26, %v742_v26  ;;  %2072 = vst [vmem:[%s2817_s3 + $0x98] sm:$0xff] %v1992_v4   ;;  %v696_v50 = vmax.f32 %v552_v0, 0.0 }
  0xfb   :  { %v1637_v45 = vadd.f32 %v1636_v35, %v1574_v34  ;;  %v1937_v46 = vpack.c.bf16 %v740_v37, %v739_v13  ;;  %v1510_v47 = vadd.f32 %v1509_v33, %v740_v37  ;;  %v1575_v51 = vmul.f32 %v740_v37, %v740_v37  ;;  %v2544_v43 = vpop.f32.mrf.mxu1 }
  0xfc   :  { %2062 = vst [vmem:[%s2817_s3 + $0x48] sm:$0xff] %v1942_v39   ;;  %v679_v53 = vmax.f32 %v485_v41, 0.0  ;;  %v496_v54 = vadd.f32 %v2149_v42, %v2403_v36  ;;  %v487_v55 = vpop.f32.mrf.mxu0  ;;  %v745_v11 = vmin.f32 %v681_v52, 6.0  ;;  %v2536_v30 = vmin.f32 %v696_v50, 6.0 }
  0xfd   :  { %2061 = vst [vmem:[%s2817_s3 + $0x40] sm:$0xff] %v1937_v46   ;;  %v1511_v59 = vadd.f32 %v1510_v47, %v741_v12  ;;  %v1638_v62 = vadd.f32 %v1637_v45, %v1575_v51  ;;  %v488_v63 = vadd.f32 %v2403_v36, %v487_v55  ;;  %v573_v55 = vadd.f32 %v2449_v60, %v2403_v36 }
  0xfe   :  { %v743_v1 = vmin.f32 %v679_v53, 6.0  ;;  %v682_v2 = vmax.f32 %v496_v54, 0.0  ;;  %v2152_v19 = vpop.f32.mrf.mxu0  ;;  %v1987_v42 = vpack.c.bf16 %v2536_v30, %v2525_v3  ;;  %v1580_v45 = vmul.f32 %v745_v11, %v745_v11 }
  0xff   :  { %v1639_v8 = vadd.f32 %v1638_v62, %v1576_v40  ;;  %v1512_v9 = vadd.f32 %v1511_v59, %v742_v26  ;;  %v680_v10 = vmax.f32 %v488_v63, 0.0  ;;  %v509_v13 = vadd.f32 %v2152_v19, %v2403_v36 }
 0x100   :  { %v746_v12 = vmin.f32 %v682_v2, 6.0  ;;  %v500_v16 = vpop.f32.mrf.mxu0  ;;  %v1578_v21 = vmul.f32 %v743_v1, %v743_v1  ;;  %2071 = vst [vmem:[%s2817_s3 + $0x90] sm:$0xff] %v1987_v42   ;;  %v701_v50 = vmax.f32 %v573_v55, 0.0 }
 0x101   :  { %v1513_v18 = vadd.f32 %v1512_v9, %v743_v1  ;;  %v1640_v22 = vadd.f32 %v1639_v8, %v1577_v5  ;;  %v744_v24 = vmin.f32 %v680_v10, 6.0  ;;  %v501_v26 = vadd.f32 %v2403_v36, %v500_v16  ;;  %v2560_v8 = vpop.f32.mrf.mxu1 }
 0x102   :  { %v1952_v25 = vpack.c.bf16 %v746_v12, %v745_v11  ;;  %v2153_v28 = vpop.f32.mrf.mxu0  ;;  %v685_v37 = vmax.f32 %v509_v13, 0.0  ;;  %v1581_v59 = vmul.f32 %v746_v12, %v746_v12  ;;  %v2558_v5 = vmul.f32 %v2445_v58, %v2445_v58 }
 0x103   :  { %v1641_v29 = vadd.f32 %v1640_v22, %v1578_v21  ;;  %v1947_v33 = vpack.c.bf16 %v744_v24, %v743_v1  ;;  %v1514_v34 = vadd.f32 %v1513_v18, %v744_v24  ;;  %v1579_v35 = vmul.f32 %v744_v24, %v744_v24 }
 0x104   :  { %2064 = vst [vmem:[%s2817_s3 + $0x58] sm:$0xff] %v1952_v25   ;;  %v683_v40 = vmax.f32 %v501_v26, 0.0  ;;  %v512_v39 = vadd.f32 %v2153_v28, %v2403_v36  ;;  %v503_v41 = vpop.f32.mrf.mxu0  ;;  %v749_v1 = vmin.f32 %v685_v37, 6.0  ;;  %v565_v18 = vadd.f32 %v2403_v36, %v2455_v6 }
 0x105   :  { %2063 = vst [vmem:[%s2817_s3 + $0x50] sm:$0xff] %v1947_v33   ;;  %v1515_v46 = vadd.f32 %v1514_v34, %v745_v11  ;;  %v1642_v47 = vadd.f32 %v1641_v29, %v1579_v35  ;;  %v504_v51 = vadd.f32 %v2403_v36, %v503_v41  ;;  %v2569_v35 = vpop.f32.mrf.mxu1 }
 0x106   :  { %v747_v52 = vmin.f32 %v683_v40, 6.0  ;;  %v686_v53 = vmax.f32 %v512_v39, 0.0  ;;  %v2156_v54 = vpop.f32.mrf.mxu0  ;;  %v1584_v26 = vmul.f32 %v749_v1, %v749_v1 }
 0x107   :  { %v1643_v62 = vadd.f32 %v1642_v47, %v1580_v45  ;;  %v1516_v63 = vadd.f32 %v1515_v46, %v746_v12  ;;  %v684_v0 = vmax.f32 %v504_v51, 0.0  ;;  %v525_v19 = vadd.f32 %v2156_v54, %v2403_v36 }
 0x108   :  { %v750_v2 = vmin.f32 %v686_v53, 6.0  ;;  %v516_v4 = vpop.f32.mrf.mxu0  ;;  %v1582_v10 = vmul.f32 %v747_v52, %v747_v52  ;;  %v699_v45 = vmax.f32 %v565_v18, 0.0  ;;  %v576_v46 = vadd.f32 %v2460_v15, %v2403_v36 }
 0x109   :  { %v1517_v9 = vadd.f32 %v1516_v63, %v747_v52  ;;  %v1644_v11 = vadd.f32 %v1643_v62, %v1581_v59  ;;  %v748_v13 = vmin.f32 %v684_v0, 6.0  ;;  %v517_v16 = vadd.f32 %v2403_v36, %v516_v4  ;;  %v2581_v63 = vpop.f32.mrf.mxu1 }
 0x10a   :  { %v1962_v60 = vpack.c.bf16 %v750_v2, %v749_v1  ;;  %v2157_v12 = vpop.f32.mrf.mxu0  ;;  %v689_v28 = vmax.f32 %v525_v19, 0.0  ;;  %v1585_v37 = vmul.f32 %v750_v2, %v750_v2  ;;  %v2577_v53 = vmin.f32 %v701_v50, 6.0 }
 0x10b   :  { %v1645_v21 = vadd.f32 %v1644_v11, %v1582_v10  ;;  %v1957_v22 = vpack.c.bf16 %v748_v13, %v747_v52  ;;  %v1518_v24 = vadd.f32 %v1517_v9, %v748_v13  ;;  %v1583_v25 = vmul.f32 %v748_v13, %v748_v13 }
 0x10c   :  { %2066 = vst [vmem:[%s2817_s3 + $0x68] sm:$0xff] %v1962_v60   ;;  %v687_v29 = vmax.f32 %v517_v16, 0.0  ;;  %v528_v33 = vadd.f32 %v2157_v12, %v2403_v36  ;;  %v519_v34 = vpop.f32.mrf.mxu0  ;;  %v753_v54 = vmin.f32 %v689_v28, 6.0  ;;  %v702_v59 = vmax.f32 %v576_v46, 0.0 }
 0x10d   :  { %2065 = vst [vmem:[%s2817_s3 + $0x60] sm:$0xff] %v1957_v22   ;;  %v1519_v6 = vadd.f32 %v1518_v24, %v749_v1  ;;  %v1646_v40 = vadd.f32 %v1645_v21, %v1583_v25  ;;  %v520_v39 = vadd.f32 %v2403_v36, %v519_v34  ;;  %v568_v62 = vadd.f32 %v2403_v36, %v2468_v27  ;;  %v2596_v21 = vpop.f32.mrf.mxu1 }
 0x10e   :  { %v751_v41 = vmin.f32 %v687_v29, 6.0  ;;  %v690_v42 = vmax.f32 %v528_v33, 0.0  ;;  %v2583_v10 = vmin.f32 %v699_v45, 6.0  ;;  %v2585_v15 = vmin.f32 %v702_v59, 6.0 }
 0x10f   :  { %v1647_v47 = vadd.f32 %v1646_v40, %v1584_v26  ;;  %v1520_v51 = vadd.f32 %v1519_v6, %v750_v2  ;;  %v688_v52 = vmax.f32 %v520_v39, 0.0  ;;  %v700_v2 = vmax.f32 %v568_v62, 0.0 }
 0x110   :  { %v754_v55 = vmin.f32 %v690_v42, 6.0  ;;  %v1586_v1 = vmul.f32 %v751_v41, %v751_v41  ;;  %v1588_v12 = vmul.f32 %v753_v54, %v753_v54  ;;  %v2002_v27 = vpack.c.bf16 %v2585_v15, %v2577_v53  ;;  %v2185_v42 = vpop.f32.mrf.mxu1 }
 0x111   :  { %v1521_v0 = vadd.f32 %v1520_v51, %v751_v41  ;;  %v1648_v19 = vadd.f32 %v1647_v47, %v1585_v37  ;;  %v752_v4 = vmin.f32 %v688_v52, 6.0  ;;  %v2592_v50 = vmin.f32 %v700_v2, 6.0 }
 0x112   :  { %v1972_v9 = vpack.c.bf16 %v754_v55, %v753_v54  ;;  %v589_v18 = vadd.f32 %v2477_v38, %v2403_v36  ;;  %v581_v25 = vadd.f32 %v2403_v36, %v2482_v48  ;;  %v592_v26 = vadd.f32 %v2485_v61, %v2403_v36  ;;  %2074 = vst [vmem:[%s2817_s3 + $0xa8] sm:$0xff] %v2002_v27  }
 0x113   :  { %v1649_v11 = vadd.f32 %v1648_v19, %v1586_v1  ;;  %v1967_v13 = vpack.c.bf16 %v752_v4, %v751_v41  ;;  %v1522_v60 = vadd.f32 %v1521_v0, %v752_v4  ;;  %v1587_v16 = vmul.f32 %v752_v4, %v752_v4  ;;  %v631_v1 = vpop.f32.mrf.mxu1 }
 0x114   :  { %2068 = vst [vmem:[%s2817_s3 + $0x78] sm:$0xff] %v1972_v9   ;;  %v1589_v28 = vmul.f32 %v754_v55, %v754_v55  ;;  %v1997_v38 = vpack.c.bf16 %v2592_v50, %v2583_v10  ;;  %v705_v29 = vmax.f32 %v589_v18, 0.0  ;;  %v584_v33 = vadd.f32 %v2403_v36, %v2491_v7 }
 0x115   :  { %2067 = vst [vmem:[%s2817_s3 + $0x70] sm:$0xff] %v1967_v13   ;;  %v1523_v22 = vadd.f32 %v1522_v60, %v753_v54  ;;  %v1650_v24 = vadd.f32 %v1649_v11, %v1587_v16  ;;  %v703_v6 = vmax.f32 %v581_v25, 0.0  ;;  %v706_v40 = vmax.f32 %v592_v26, 0.0 }
 0x116   :  { %2073 = vst [vmem:[%s2817_s3 + $0xa0] sm:$0xff] %v1997_v38   ;;  %v2615_v48 = vmin.f32 %v705_v29, 6.0  ;;  %v704_v61 = vmax.f32 %v584_v33, 0.0  ;;  %v605_v39 = vadd.f32 %v2501_v20, %v2403_v36  ;;  %v597_v41 = vadd.f32 %v2403_v36, %v2506_v32 }
 0x117   :  { %v1651_v34 = vadd.f32 %v1650_v24, %v1588_v12  ;;  %v1524_v37 = vadd.f32 %v1523_v22, %v754_v55  ;;  %v2622_v46 = vmin.f32 %v703_v6, 6.0  ;;  %v2624_v47 = vmin.f32 %v706_v40, 6.0  ;;  %v2188_v24 = vpop.f32.mrf.mxu1 }
 0x118   :  { %v1591_v51 = vmul.f32 %v2458_v14, %v2458_v14  ;;  %v2628_v52 = vmin.f32 %v704_v61, 6.0  ;;  %v709_v54 = vmax.f32 %v605_v39, 0.0  ;;  %v707_v59 = vmax.f32 %v597_v41, 0.0 }
 0x119   :  { %v1525_v7 = vadd.f32 %v1524_v37, %v2445_v58  ;;  %v1652_v45 = vadd.f32 %v1651_v34, %v1589_v28  ;;  %v2012_v32 = vpack.c.bf16 %v2624_v47, %v2615_v48  ;;  %v1592_v58 = vmul.f32 %v2423_v23, %v2423_v23  ;;  %v644_v6 = vpop.f32.mrf.mxu1 }
 0x11a   :  { %v1593_v62 = vmul.f32 %v2436_v49, %v2436_v49  ;;  %v2007_v0 = vpack.c.bf16 %v2628_v52, %v2622_v46  ;;  %v2651_v9 = vmin.f32 %v709_v54, 6.0  ;;  %v621_v2 = vadd.f32 %v2533_v17, %v2403_v36 }
 0x11b   :  { %v1526_v55 = vadd.f32 %v1525_v7, %v2458_v14  ;;  %v1653_v20 = vadd.f32 %v1652_v45, %v2558_v5  ;;  %v1594_v14 = vmul.f32 %v2525_v3, %v2525_v3  ;;  %2076 = vst [vmem:[%s2817_s3 + $0xb8] sm:$0xff] %v2012_v32   ;;  %v608_v5 = vadd.f32 %v2509_v44, %v2403_v36 }
 0x11c   :  { %2075 = vst [vmem:[%s2817_s3 + $0xb0] sm:$0xff] %v2007_v0   ;;  %v613_v11 = vadd.f32 %v2403_v36, %v2544_v43  ;;  %v2660_v16 = vmin.f32 %v707_v59, 6.0  ;;  %v713_v27 = vmax.f32 %v621_v2, 0.0  ;;  %v624_v22 = vadd.f32 %v2560_v8, %v2403_v36 }
 0x11d   :  { %v1527_v19 = vadd.f32 %v1526_v55, %v2423_v23  ;;  %v1654_v4 = vadd.f32 %v1653_v20, %v1591_v51  ;;  %v600_v23 = vadd.f32 %v2403_v36, %v2517_v57  ;;  %v710_v44 = vmax.f32 %v608_v5, 0.0 }
 0x11e   :  { %v711_v18 = vmax.f32 %v613_v11, 0.0  ;;  %v616_v43 = vadd.f32 %v2403_v36, %v2569_v35  ;;  %v714_v28 = vmax.f32 %v624_v22, 0.0  ;;  %v2676_v33 = vmin.f32 %v713_v27, 6.0 }
 0x11f   :  { %v1655_v13 = vadd.f32 %v1654_v4, %v1592_v58  ;;  %v1528_v60 = vadd.f32 %v1527_v19, %v2436_v49  ;;  %v708_v12 = vmax.f32 %v600_v23, 0.0  ;;  %v2665_v17 = vmin.f32 %v710_v44, 6.0 }
 0x120   :  { %v1595_v49 = vmul.f32 %v2536_v30, %v2536_v30  ;;  %v1597_v35 = vmul.f32 %v2515_v56, %v2515_v56  ;;  %v2684_v37 = vmin.f32 %v711_v18, 6.0  ;;  %v2690_v61 = vmin.f32 %v714_v28, 6.0 }
 0x121   :  { %v1529_v57 = vadd.f32 %v1528_v60, %v2525_v3  ;;  %v1656_v25 = vadd.f32 %v1655_v13, %v1593_v62  ;;  %v2671_v26 = vmin.f32 %v708_v12, 6.0  ;;  %v2022_v8 = vpack.c.bf16 %v2665_v17, %v2651_v9  ;;  %v2189_v62 = vpop.f32.mrf.mxu1 }
 0x122   :  { %v1596_v3 = vmul.f32 %v2504_v31, %v2504_v31  ;;  %v712_v39 = vmax.f32 %v616_v43, 0.0  ;;  %v637_v41 = vadd.f32 %v2581_v63, %v2403_v36  ;;  %v629_v7 = vadd.f32 %v2403_v36, %v2596_v21 }
 0x123   :  { %v1657_v38 = vadd.f32 %v1656_v25, %v1594_v14  ;;  %v1530_v29 = vadd.f32 %v1529_v57, %v2536_v30  ;;  %v2017_v34 = vpack.c.bf16 %v2671_v26, %v2660_v16  ;;  %2078 = vst [vmem:[%s2817_s3 + $0xc8] sm:$0xff] %v2022_v8   ;;  %v632_v45 = vadd.f32 %v2403_v36, %v631_v1  ;;  %v647_v60 = vpop.f32.mrf.mxu1 }
 0x124   :  { %v1598_v55 = vmul.f32 %v2583_v10, %v2583_v10  ;;  %v2032_v20 = vpack.c.bf16 %v2690_v61, %v2676_v33  ;;  %v2706_v32 = vmin.f32 %v712_v39, 6.0  ;;  %v717_v59 = vmax.f32 %v637_v41, 0.0 }
 0x125   :  { %v1531_v40 = vadd.f32 %v1530_v29, %v2504_v31  ;;  %v1658_v30 = vadd.f32 %v1657_v38, %v1595_v49  ;;  %2077 = vst [vmem:[%s2817_s3 + $0xc0] sm:$0xff] %v2017_v34   ;;  %v640_v31 = vadd.f32 %v2185_v42, %v2403_v36  ;;  %v715_v63 = vmax.f32 %v629_v7, 0.0 }
 0x126   :  { %2080 = vst [vmem:[%s2817_s3 + $0xd8] sm:$0xff] %v2032_v20   ;;  %v653_v0 = vadd.f32 %v2188_v24, %v2403_v36  ;;  %v1599_v1 = vmul.f32 %v2592_v50, %v2592_v50  ;;  %v2027_v19 = vpack.c.bf16 %v2706_v32, %v2684_v37  ;;  %v2717_v4 = vmin.f32 %v717_v59, 6.0 }
 0x127   :  { %v1659_v51 = vadd.f32 %v1658_v30, %v1596_v3  ;;  %v1532_v54 = vadd.f32 %v1531_v40, %v2515_v56  ;;  %v718_v58 = vmax.f32 %v640_v31, 0.0  ;;  %v716_v56 = vmax.f32 %v632_v45, 0.0 }
 0x128   :  { %v2719_v14 = vmin.f32 %v715_v63, 6.0  ;;  %2079 = vst [vmem:[%s2817_s3 + $0xd0] sm:$0xff] %v2027_v19   ;;  %v721_v11 = vmax.f32 %v653_v0, 0.0  ;;  %v645_v13 = vadd.f32 %v2403_v36, %v644_v6  ;;  %v1600_v44 = vmul.f32 %v2577_v53, %v2577_v53 }
 0x129   :  { %v1533_v21 = vadd.f32 %v1532_v54, %v2583_v10  ;;  %v1660_v42 = vadd.f32 %v1659_v51, %v1597_v35  ;;  %v2722_v23 = vmin.f32 %v718_v58, 6.0  ;;  %v2724_v2 = vmin.f32 %v716_v56, 6.0 }
 0x12a   :  { %v1601_v18 = vmul.f32 %v2585_v15, %v2585_v15  ;;  %v719_v24 = vmax.f32 %v645_v13, 0.0  ;;  %v648_v43 = vadd.f32 %v2403_v36, %v647_v60  ;;  %v1602_v49 = vmul.f32 %v2622_v46, %v2622_v46 }
 0x12b   :  { %v1661_v5 = vadd.f32 %v1660_v42, %v1598_v55  ;;  %v1534_v10 = vadd.f32 %v1533_v21, %v2592_v50  ;;  %v2042_v50 = vpack.c.bf16 %v2722_v23, %v2717_v4  ;;  %v2037_v22 = vpack.c.bf16 %v2724_v2, %v2719_v14 }
 0x12c   :  { %v2750_v28 = vmin.f32 %v721_v11, 6.0  ;;  %v720_v8 = vmax.f32 %v648_v43, 0.0  ;;  %v1603_v3 = vmul.f32 %v2628_v52, %v2628_v52  ;;  %v783_v35 = vmin.f32 %v719_v24, 6.0 }
 0x12d   :  { %v1535_v12 = vadd.f32 %v1534_v10, %v2577_v53  ;;  %v1662_v27 = vadd.f32 %v1661_v5, %v1599_v1  ;;  %2082 = vst [vmem:[%s2817_s3 + $0xe8] sm:$0xff] %v2042_v50   ;;  %v656_v53 = vadd.f32 %v2189_v62, %v2403_v36  ;;  %2081 = vst [vmem:[%s2817_s3 + $0xe0] sm:$0xff] %v2037_v22  }
 0x12e   :  { %v784_v40 = vmin.f32 %v720_v8, 6.0  ;;  %v1604_v30 = vmul.f32 %v2615_v48, %v2615_v48  ;;  %v1605_v31 = vmul.f32 %v2624_v47, %v2624_v47  ;;  %v1608_v59 = vmul.f32 %v2651_v9, %v2651_v9 }
 0x12f   :  { %v1663_v57 = vadd.f32 %v1662_v27, %v1600_v44  ;;  %v1536_v25 = vadd.f32 %v1535_v12, %v2585_v15  ;;  %v722_v29 = vmax.f32 %v656_v53, 0.0  ;;  %v1609_v62 = vmul.f32 %v2665_v17, %v2665_v17 }
 0x130   :  { %v2047_v7 = vpack.c.bf16 %v784_v40, %v783_v35  ;;  %v1610_v56 = vmul.f32 %v2684_v37, %v2684_v37  ;;  %v1611_v19 = vmul.f32 %v2706_v32, %v2706_v32  ;;  %v1614_v60 = vmul.f32 %v2719_v14, %v2719_v14 }
 0x131   :  { %v1537_v38 = vadd.f32 %v1536_v25, %v2622_v46  ;;  %v1664_v15 = vadd.f32 %v1663_v57, %v1601_v18  ;;  %v786_v6 = vmin.f32 %v722_v29, 6.0  ;;  %v1615_v27 = vmul.f32 %v2724_v2, %v2724_v2 }
 0x132   :  { %2083 = vst [vmem:[%s2817_s3 + $0xf0] sm:$0xff] %v2047_v7   ;;  %v1618_v57 = vmul.f32 %v783_v35, %v783_v35 }
 0x133   :  { %v1665_v34 = vadd.f32 %v1664_v15, %v1602_v49  ;;  %v1538_v36 = vadd.f32 %v1537_v38, %v2628_v52  ;;  %v2052_v46 = vpack.c.bf16 %v786_v6, %v2750_v28  ;;  %v1606_v52 = vmul.f32 %v2660_v16, %v2660_v16 }
 0x134   :  { %v1619_v49 = vmul.f32 %v784_v40, %v784_v40 }
 0x135   :  { %v1539_v39 = vadd.f32 %v1538_v36, %v2615_v48  ;;  %v1666_v41 = vadd.f32 %v1665_v34, %v1603_v3  ;;  %2084 = vst [vmem:[%s2817_s3 + $0xf8] sm:$0xff] %v2052_v46  }
 0x137   :  { %v1667_v45 = vadd.f32 %v1666_v41, %v1604_v30  ;;  %v1540_v51 = vadd.f32 %v1539_v39, %v2624_v47  ;;  %v1607_v47 = vmul.f32 %v2671_v26, %v2671_v26 }
 0x139   :  { %v1541_v48 = vadd.f32 %v1540_v51, %v2660_v16  ;;  %v1668_v54 = vadd.f32 %v1667_v45, %v1605_v31 }
 0x13b   :  { %v1669_v55 = vadd.f32 %v1668_v54, %v1606_v52  ;;  %v1542_v20 = vadd.f32 %v1541_v48, %v2671_v26 }
 0x13d   :  { %v1543_v63 = vadd.f32 %v1542_v20, %v2651_v9  ;;  %v1670_v58 = vadd.f32 %v1669_v55, %v1607_v47  ;;  %v1612_v9 = vmul.f32 %v2676_v33, %v2676_v33 }
 0x13f   :  { %v1671_v21 = vadd.f32 %v1670_v58, %v1608_v59  ;;  %v1544_v42 = vadd.f32 %v1543_v63, %v2665_v17  ;;  %v1613_v17 = vmul.f32 %v2690_v61, %v2690_v61 }
 0x141   :  { %v1545_v16 = vadd.f32 %v1544_v42, %v2684_v37  ;;  %v1672_v0 = vadd.f32 %v1671_v21, %v1609_v62 }
 0x143   :  { %v1673_v1 = vadd.f32 %v1672_v0, %v1610_v56  ;;  %v1546_v26 = vadd.f32 %v1545_v16, %v2706_v32 }
 0x145   :  { %v1547_v5 = vadd.f32 %v1546_v26, %v2676_v33  ;;  %v1674_v10 = vadd.f32 %v1673_v1, %v1611_v19  ;;  %v1616_v33 = vmul.f32 %v2717_v4, %v2717_v4 }
 0x147   :  { %v1675_v11 = vadd.f32 %v1674_v10, %v1612_v9  ;;  %v1548_v13 = vadd.f32 %v1547_v5, %v2690_v61  ;;  %v1617_v61 = vmul.f32 %v2722_v23, %v2722_v23 }
 0x149   :  { %v1549_v37 = vadd.f32 %v1548_v13, %v2719_v14  ;;  %v1676_v44 = vadd.f32 %v1675_v11, %v1613_v17 }
 0x14b   :  { %v1677_v12 = vadd.f32 %v1676_v44, %v1614_v60  ;;  %v1550_v32 = vadd.f32 %v1549_v37, %v2724_v2  ;;  %v1620_v2 = vmul.f32 %v2750_v28, %v2750_v28 }
 0x14d   :  { %v1551_v50 = vadd.f32 %v1550_v32, %v2717_v4  ;;  %v1678_v18 = vadd.f32 %v1677_v12, %v1615_v27  ;;  %v1621_v4 = vmul.f32 %v786_v6, %v786_v6 }
 0x14f   :  { %v1679_v22 = vadd.f32 %v1678_v18, %v1616_v33  ;;  %v1552_v24 = vadd.f32 %v1551_v50, %v2722_v23 }
 0x151   :  { %v1553_v14 = vadd.f32 %v1552_v24, %v783_v35  ;;  %v1680_v25 = vadd.f32 %v1679_v22, %v1617_v61 }
 0x153   :  { %v1681_v53 = vadd.f32 %v1680_v25, %v1618_v57  ;;  %v1554_v43 = vadd.f32 %v1553_v14, %v784_v40 }
 0x155   :  { %v1555_v38 = vadd.f32 %v1554_v43, %v2750_v28  ;;  %v1682_v15 = vadd.f32 %v1681_v53, %v1619_v49 }
 0x157   :  { %v1556_v29 = vadd.f32 %v1555_v38, %v786_v6  ;;  %v1683_v8 = vadd.f32 %v1682_v15, %v1620_v2 }
 0x159   :  { %1557 = vst [vmem:[%s2818_s4] sm:$0xff] %v1556_v29  ;;  %v1684_v23 = vadd.f32 %v1683_v8, %v1621_v4 }
 0x15b   :  { %1685 = vst [vmem:[%s2819_s5] sm:$0xff] %v1684_v23 }

// kernel: conv_block_forward.3
= control target key start
LH: loop header
LB: loop body
LE: loop exit
PB: predicated region body
PF: predicated region fallthrough
CT: control target
= control target key end

     0   :  { %vm379_vm0 = vcmask 1043456   ;;  %vm282_vm1 = vcmask 588800   ;;  %s1522_s1 = inlined_call_operand.vmem [shape: bf16[72,128], index: 1, kind: input, shape index: {}]   ;;  %s1523_s0 = inlined_call_operand.vmem [shape: bf16[512,72], index: 0, kind: input, shape index: {}]   ;;  %s1524_s2 = inlined_call_operand.vmem [shape: f32[1,128], index: 2, kind: input, shape index: {}]   ;;  %s1525_s3 = inlined_call_operand.vmem [shape: f32[512,128], index: 3, kind: output, shape index: {}]  }
   0x1   :  { %v1061_v0 = vld [vmem:[%s1522_s1 + $0x20] ss:$0 sps:$4 sm:$0xff]   ;;  %v1062_v1 = vld [vmem:[%s1522_s1 + $0x18] sm:$0xff]   ;;  %v1063_v3 = vld [vmem:[%s1522_s1 + $0x10] sm:$0xff]  }
   0x2   :  { %1059 = vmatprep.subr.msk.bf16.mxu0 %vm379_vm0, %v1061_v0  ;;  %1060 = vmatprep.subr.msk.bf16.mxu1 %vm379_vm0, %v1061_v0  ;;  %v381_v2 = vsel %vm379_vm0, %v1061_v0, 0  ;;  %v1066_v4 = vld [vmem:[%s1523_s0] sm:$0xff]   ;;  %v1064_v6 = vld [vmem:[%s1522_s1 + $0x8] sm:$0xff]   ;;  %v1070_v10 = vld [vmem:[%s1523_s0 + $0x10] sm:$0xff]  }
   0x3   :  { %976 = vmatpush3.bf16.msra.mxu0 %v381_v2  ;;  %1054 = vmatpush3.bf16.msra.mxu1 %v381_v2  ;;  %v1067_v5 = vld [vmem:[%s1523_s0 + $0x80] sm:$0xff]   ;;  %v1068_v8 = vld [vmem:[%s1523_s0 + $0x8] sm:$0xff]   ;;  %v1071_v11 = vld [vmem:[%s1523_s0 + $0x90] sm:$0xff]  }
   0x4   :  { %977 = vmatprep.subr.bf16.mxu0 %v1062_v1  ;;  %1050 = vmatprep.subr.bf16.mxu1 %v1062_v1  ;;  %v1065_v7 = vld [vmem:[%s1522_s1] sm:$0xff]   ;;  %v1069_v9 = vld [vmem:[%s1523_s0 + $0x88] sm:$0xff]   ;;  %v1072_v12 = vld [vmem:[%s1523_s0 + $0x18] sm:$0xff]  }
   0x5   :  { %985 = vmatprep.mubr.msk.bf16.mxu0 %vm282_vm1, %v1066_v4  ;;  %1017 = vmatprep.mubr.msk.bf16.mxu1 %vm282_vm1, %v1067_v5  ;;  %v1073_v13 = vld [vmem:[%s1523_s0 + $0x98] sm:$0xff]   ;;  %v1074_v14 = vld [vmem:[%s1523_s0 + $0x20] sm:$0xff]   ;;  %v1076_v16 = vld [vmem:[%s1523_s0 + $0x28] sm:$0xff]  }
   0x6   :  { %v1075_v15 = vld [vmem:[%s1523_s0 + $0xa0] sm:$0xff]   ;;  %v1077_v17 = vld [vmem:[%s1523_s0 + $0xa8] sm:$0xff]   ;;  %v1078_v18 = vld [vmem:[%s1523_s0 + $0x30] sm:$0xff]  }
   0x7   :  { %978 = vmatpush3.bf16.msra.mxu0 %v1062_v1  ;;  %1055 = vmatpush3.bf16.msra.mxu1 %v1062_v1  ;;  %v1079_v19 = vld [vmem:[%s1523_s0 + $0xb0] sm:$0xff]   ;;  %v1080_v20 = vld [vmem:[%s1523_s0 + $0x38] sm:$0xff]   ;;  %v1082_v22 = vld [vmem:[%s1523_s0 + $0x40] sm:$0xff]  }
   0x8   :  { %979 = vmatprep.subr.bf16.mxu0 %v1063_v3  ;;  %1051 = vmatprep.subr.bf16.mxu1 %v1063_v3  ;;  %v1081_v21 = vld [vmem:[%s1523_s0 + $0xb8] sm:$0xff]   ;;  %v1083_v23 = vld [vmem:[%s1523_s0 + $0xc0] sm:$0xff]   ;;  %v1084_v24 = vld [vmem:[%s1523_s0 + $0x48] sm:$0xff]  }
   0x9   :  { %v1085_v25 = vld [vmem:[%s1523_s0 + $0xc8] sm:$0xff]   ;;  %v1086_v26 = vld [vmem:[%s1523_s0 + $0x50] sm:$0xff]   ;;  %v1088_v28 = vld [vmem:[%s1523_s0 + $0x58] sm:$0xff]  }
   0xa   :  { %v1087_v27 = vld [vmem:[%s1523_s0 + $0xd0] sm:$0xff]   ;;  %v1089_v29 = vld [vmem:[%s1523_s0 + $0xd8] sm:$0xff]   ;;  %v1090_v30 = vld [vmem:[%s1523_s0 + $0x60] sm:$0xff]  }
   0xb   :  { %980 = vmatpush3.bf16.msra.mxu0 %v1063_v3  ;;  %1056 = vmatpush3.bf16.msra.mxu1 %v1063_v3  ;;  %v1091_v31 = vld [vmem:[%s1523_s0 + $0xe0] sm:$0xff]   ;;  %v1092_v32 = vld [vmem:[%s1523_s0 + $0x68] sm:$0xff]   ;;  %v1094_v34 = vld [vmem:[%s1523_s0 + $0x70] sm:$0xff]  }
   0xc   :  { %981 = vmatprep.subr.bf16.mxu0 %v1064_v6  ;;  %1052 = vmatprep.subr.bf16.mxu1 %v1064_v6  ;;  %v1093_v33 = vld [vmem:[%s1523_s0 + $0xe8] sm:$0xff]   ;;  %v1095_v35 = vld [vmem:[%s1523_s0 + $0xf0] sm:$0xff]   ;;  %v1096_v36 = vld [vmem:[%s1523_s0 + $0x78] sm:$0xff]  }
   0xd   :  { %v1097_v37 = vld [vmem:[%s1523_s0 + $0xf8] sm:$0xff]   ;;  %v1264_v38 = vld [vmem:[%s1524_s2] ss:$0 sm:$0xff] }
   0xf   :  { %982 = vmatpush3.bf16.msra.mxu0 %v1064_v6  ;;  %1057 = vmatpush3.bf16.msra.mxu1 %v1064_v6 }
  0x10   :  { %983 = vmatprep.subr.bf16.mxu0 %v1065_v7  ;;  %1053 = vmatprep.subr.bf16.mxu1 %v1065_v7 }
  0x13   :  { %984 = vmatpush3.bf16.msra.mxu0 %v1065_v7  ;;  %1058 = vmatpush3.bf16.msra.mxu1 %v1065_v7 }
  0x16   :  { %986 = vmatmul.mubr.msk.bf16.vlgmr.msra.gmra.mxu0 %vm282_vm1, %v1068_v8  ;;  %1018 = vmatmul.mubr.msk.bf16.vlgmr.msra.gmra.mxu1 %vm282_vm1, %v1069_v9 }
  0x17   :  { %989 = vmatprep.mubr.msk.bf16.mxu0 %vm282_vm1, %v1070_v10  ;;  %1021 = vmatprep.mubr.msk.bf16.mxu1 %vm282_vm1, %v1071_v11 }
  0x1e   :  { %990 = vmatmul.mubr.msk.bf16.gmra.mxu0 %vm282_vm1, %v1072_v12  ;;  %1022 = vmatmul.mubr.msk.bf16.gmra.mxu1 %vm282_vm1, %v1073_v13 }
  0x1f   :  { %993 = vmatprep.mubr.msk.bf16.mxu0 %vm282_vm1, %v1074_v14  ;;  %1025 = vmatprep.mubr.msk.bf16.mxu1 %vm282_vm1, %v1075_v15 }
  0x26   :  { %994 = vmatmul.mubr.msk.bf16.gmra.mxu0 %vm282_vm1, %v1076_v16  ;;  %1026 = vmatmul.mubr.msk.bf16.gmra.mxu1 %vm282_vm1, %v1077_v17 }
  0x27   :  { %997 = vmatprep.mubr.msk.bf16.mxu0 %vm282_vm1, %v1078_v18  ;;  %1029 = vmatprep.mubr.msk.bf16.mxu1 %vm282_vm1, %v1079_v19 }
  0x2e   :  { %998 = vmatmul.mubr.msk.bf16.gmra.mxu0 %vm282_vm1, %v1080_v20  ;;  %1030 = vmatmul.mubr.msk.bf16.gmra.mxu1 %vm282_vm1, %v1081_v21 }
  0x2f   :  { %1001 = vmatprep.mubr.msk.bf16.mxu0 %vm282_vm1, %v1082_v22  ;;  %1033 = vmatprep.mubr.msk.bf16.mxu1 %vm282_vm1, %v1083_v23 }
  0x36   :  { %1002 = vmatmul.mubr.msk.bf16.gmra.mxu0 %vm282_vm1, %v1084_v24  ;;  %1034 = vmatmul.mubr.msk.bf16.gmra.mxu1 %vm282_vm1, %v1085_v25 }
  0x37   :  { %1005 = vmatprep.mubr.msk.bf16.mxu0 %vm282_vm1, %v1086_v26  ;;  %1037 = vmatprep.mubr.msk.bf16.mxu1 %vm282_vm1, %v1087_v27 }
  0x3e   :  { %1006 = vmatmul.mubr.msk.bf16.gmra.mxu0 %vm282_vm1, %v1088_v28  ;;  %1038 = vmatmul.mubr.msk.bf16.gmra.mxu1 %vm282_vm1, %v1089_v29 }
  0x3f   :  { %1009 = vmatprep.mubr.msk.bf16.mxu0 %vm282_vm1, %v1090_v30  ;;  %1041 = vmatprep.mubr.msk.bf16.mxu1 %vm282_vm1, %v1091_v31 }
  0x46   :  { %1010 = vmatmul.mubr.msk.bf16.gmra.mxu0 %vm282_vm1, %v1092_v32  ;;  %1042 = vmatmul.mubr.msk.bf16.gmra.mxu1 %vm282_vm1, %v1093_v33 }
  0x47   :  { %1013 = vmatprep.mubr.msk.bf16.mxu0 %vm282_vm1, %v1094_v34  ;;  %1045 = vmatprep.mubr.msk.bf16.mxu1 %vm282_vm1, %v1095_v35 }
  0x4e   :  { %1014 = vmatmul.mubr.msk.bf16.gmra.mxu0 %vm282_vm1, %v1096_v36  ;;  %1046 = vmatmul.mubr.msk.bf16.gmra.mxu1 %vm282_vm1, %v1097_v37 }
  0xd6   :  { %v987_v39 = vpop.f32.mrf.mxu0  ;;  %v1019_v40 = vpop.f32.mrf.mxu1 }
  0xd7   :  { %v426_v41 = vadd.f32 %v987_v39, %v1264_v38  ;;  %v554_v42 = vadd.f32 %v1019_v40, %v1264_v38 }
  0xd8   :  { %v417_v43 = vpop.f32.mrf.mxu0  ;;  %v545_v44 = vpop.f32.mrf.mxu1 }
  0xd9   :  { %v674_v45 = vmax.f32 %v426_v41, 0.0  ;;  %v706_v46 = vmax.f32 %v554_v42, 0.0  ;;  %v418_v47 = vadd.f32 %v1264_v38, %v417_v43  ;;  %v546_v48 = vadd.f32 %v1264_v38, %v545_v44 }
  0xda   :  { %v988_v49 = vpop.f32.mrf.mxu0  ;;  %v1020_v50 = vpop.f32.mrf.mxu1 }
  0xdb   :  { %v738_v51 = vmin.f32 %v674_v45, 6.0  ;;  %v770_v52 = vmin.f32 %v706_v46, 6.0  ;;  %v672_v53 = vmax.f32 %v418_v47, 0.0  ;;  %v704_v54 = vmax.f32 %v546_v48, 0.0 }
  0xdc   :  { %v429_v55 = vadd.f32 %v988_v49, %v1264_v38  ;;  %v557_v56 = vadd.f32 %v1020_v50, %v1264_v38  ;;  %v420_v57 = vpop.f32.mrf.mxu0  ;;  %v548_v58 = vpop.f32.mrf.mxu1 }
  0xdd   :  { %802 = vst [vmem:[%s1525_s3 + $0x10] sm:$0xff] %v738_v51  ;;  %834 = vst [vmem:[%s1525_s3 + $0x110] sm:$0xff] %v770_v52  ;;  %v736_v59 = vmin.f32 %v672_v53, 6.0  ;;  %v768_v60 = vmin.f32 %v704_v54, 6.0  ;;  %v421_v61 = vadd.f32 %v1264_v38, %v420_v57  ;;  %v549_v62 = vadd.f32 %v1264_v38, %v548_v58 }
  0xde   :  { %v675_v63 = vmax.f32 %v429_v55, 0.0  ;;  %v707_v0 = vmax.f32 %v557_v56, 0.0  ;;  %v991_v1 = vpop.f32.mrf.mxu0  ;;  %v1023_v2 = vpop.f32.mrf.mxu1 }
  0xdf   :  { %800 = vst [vmem:[%s1525_s3] sm:$0xff] %v736_v59  ;;  %832 = vst [vmem:[%s1525_s3 + $0x100] sm:$0xff] %v768_v60  ;;  %v673_v3 = vmax.f32 %v421_v61, 0.0  ;;  %v705_v4 = vmax.f32 %v549_v62, 0.0  ;;  %v442_v5 = vadd.f32 %v991_v1, %v1264_v38  ;;  %v570_v6 = vadd.f32 %v1023_v2, %v1264_v38 }
  0xe0   :  { %v739_v7 = vmin.f32 %v675_v63, 6.0  ;;  %v771_v8 = vmin.f32 %v707_v0, 6.0  ;;  %v433_v9 = vpop.f32.mrf.mxu0  ;;  %v561_v10 = vpop.f32.mrf.mxu1 }
  0xe1   :  { %v737_v11 = vmin.f32 %v673_v3, 6.0  ;;  %v769_v12 = vmin.f32 %v705_v4, 6.0  ;;  %v678_v13 = vmax.f32 %v442_v5, 0.0  ;;  %v710_v14 = vmax.f32 %v570_v6, 0.0 }
  0xe2   :  { %803 = vst [vmem:[%s1525_s3 + $0x18] sm:$0xff] %v739_v7  ;;  %835 = vst [vmem:[%s1525_s3 + $0x118] sm:$0xff] %v771_v8  ;;  %v434_v15 = vadd.f32 %v1264_v38, %v433_v9  ;;  %v562_v16 = vadd.f32 %v1264_v38, %v561_v10  ;;  %v992_v17 = vpop.f32.mrf.mxu0  ;;  %v1024_v18 = vpop.f32.mrf.mxu1 }
  0xe3   :  { %801 = vst [vmem:[%s1525_s3 + $0x8] sm:$0xff] %v737_v11  ;;  %833 = vst [vmem:[%s1525_s3 + $0x108] sm:$0xff] %v769_v12  ;;  %v742_v19 = vmin.f32 %v678_v13, 6.0  ;;  %v774_v20 = vmin.f32 %v710_v14, 6.0  ;;  %v445_v21 = vadd.f32 %v992_v17, %v1264_v38  ;;  %v573_v22 = vadd.f32 %v1024_v18, %v1264_v38 }
  0xe4   :  { %v676_v23 = vmax.f32 %v434_v15, 0.0  ;;  %v708_v24 = vmax.f32 %v562_v16, 0.0  ;;  %v436_v25 = vpop.f32.mrf.mxu0  ;;  %v564_v26 = vpop.f32.mrf.mxu1 }
  0xe5   :  { %806 = vst [vmem:[%s1525_s3 + $0x30] sm:$0xff] %v742_v19  ;;  %838 = vst [vmem:[%s1525_s3 + $0x130] sm:$0xff] %v774_v20  ;;  %v679_v27 = vmax.f32 %v445_v21, 0.0  ;;  %v711_v28 = vmax.f32 %v573_v22, 0.0  ;;  %v437_v29 = vadd.f32 %v1264_v38, %v436_v25  ;;  %v565_v30 = vadd.f32 %v1264_v38, %v564_v26 }
  0xe6   :  { %v740_v31 = vmin.f32 %v676_v23, 6.0  ;;  %v772_v32 = vmin.f32 %v708_v24, 6.0  ;;  %v995_v33 = vpop.f32.mrf.mxu0  ;;  %v1027_v34 = vpop.f32.mrf.mxu1 }
  0xe7   :  { %v743_v35 = vmin.f32 %v679_v27, 6.0  ;;  %v775_v36 = vmin.f32 %v711_v28, 6.0  ;;  %v677_v37 = vmax.f32 %v437_v29, 0.0  ;;  %v709_v39 = vmax.f32 %v565_v30, 0.0 }
  0xe8   :  { %804 = vst [vmem:[%s1525_s3 + $0x20] sm:$0xff] %v740_v31  ;;  %836 = vst [vmem:[%s1525_s3 + $0x120] sm:$0xff] %v772_v32  ;;  %v458_v40 = vadd.f32 %v995_v33, %v1264_v38  ;;  %v586_v41 = vadd.f32 %v1027_v34, %v1264_v38  ;;  %v449_v42 = vpop.f32.mrf.mxu0  ;;  %v577_v43 = vpop.f32.mrf.mxu1 }
  0xe9   :  { %807 = vst [vmem:[%s1525_s3 + $0x38] sm:$0xff] %v743_v35  ;;  %839 = vst [vmem:[%s1525_s3 + $0x138] sm:$0xff] %v775_v36  ;;  %v741_v44 = vmin.f32 %v677_v37, 6.0  ;;  %v773_v45 = vmin.f32 %v709_v39, 6.0  ;;  %v450_v46 = vadd.f32 %v1264_v38, %v449_v42  ;;  %v578_v47 = vadd.f32 %v1264_v38, %v577_v43 }
  0xea   :  { %v682_v48 = vmax.f32 %v458_v40, 0.0  ;;  %v714_v49 = vmax.f32 %v586_v41, 0.0  ;;  %v996_v50 = vpop.f32.mrf.mxu0  ;;  %v1028_v51 = vpop.f32.mrf.mxu1 }
  0xeb   :  { %805 = vst [vmem:[%s1525_s3 + $0x28] sm:$0xff] %v741_v44  ;;  %837 = vst [vmem:[%s1525_s3 + $0x128] sm:$0xff] %v773_v45  ;;  %v680_v52 = vmax.f32 %v450_v46, 0.0  ;;  %v712_v53 = vmax.f32 %v578_v47, 0.0  ;;  %v461_v54 = vadd.f32 %v996_v50, %v1264_v38  ;;  %v589_v55 = vadd.f32 %v1028_v51, %v1264_v38 }
  0xec   :  { %v746_v56 = vmin.f32 %v682_v48, 6.0  ;;  %v778_v57 = vmin.f32 %v714_v49, 6.0  ;;  %v452_v58 = vpop.f32.mrf.mxu0  ;;  %v580_v59 = vpop.f32.mrf.mxu1 }
  0xed   :  { %v744_v60 = vmin.f32 %v680_v52, 6.0  ;;  %v776_v61 = vmin.f32 %v712_v53, 6.0  ;;  %v683_v62 = vmax.f32 %v461_v54, 0.0  ;;  %v715_v63 = vmax.f32 %v589_v55, 0.0 }
  0xee   :  { %810 = vst [vmem:[%s1525_s3 + $0x50] sm:$0xff] %v746_v56  ;;  %842 = vst [vmem:[%s1525_s3 + $0x150] sm:$0xff] %v778_v57  ;;  %v453_v0 = vadd.f32 %v1264_v38, %v452_v58  ;;  %v581_v1 = vadd.f32 %v1264_v38, %v580_v59  ;;  %v999_v2 = vpop.f32.mrf.mxu0  ;;  %v1031_v3 = vpop.f32.mrf.mxu1 }
  0xef   :  { %808 = vst [vmem:[%s1525_s3 + $0x40] sm:$0xff] %v744_v60  ;;  %840 = vst [vmem:[%s1525_s3 + $0x140] sm:$0xff] %v776_v61  ;;  %v747_v4 = vmin.f32 %v683_v62, 6.0  ;;  %v779_v5 = vmin.f32 %v715_v63, 6.0  ;;  %v474_v6 = vadd.f32 %v999_v2, %v1264_v38  ;;  %v602_v7 = vadd.f32 %v1031_v3, %v1264_v38 }
  0xf0   :  { %v681_v8 = vmax.f32 %v453_v0, 0.0  ;;  %v713_v9 = vmax.f32 %v581_v1, 0.0  ;;  %v465_v10 = vpop.f32.mrf.mxu0  ;;  %v593_v11 = vpop.f32.mrf.mxu1 }
  0xf1   :  { %811 = vst [vmem:[%s1525_s3 + $0x58] sm:$0xff] %v747_v4  ;;  %843 = vst [vmem:[%s1525_s3 + $0x158] sm:$0xff] %v779_v5  ;;  %v686_v12 = vmax.f32 %v474_v6, 0.0  ;;  %v718_v13 = vmax.f32 %v602_v7, 0.0  ;;  %v466_v14 = vadd.f32 %v1264_v38, %v465_v10  ;;  %v594_v15 = vadd.f32 %v1264_v38, %v593_v11 }
  0xf2   :  { %v745_v16 = vmin.f32 %v681_v8, 6.0  ;;  %v777_v17 = vmin.f32 %v713_v9, 6.0  ;;  %v1000_v18 = vpop.f32.mrf.mxu0  ;;  %v1032_v19 = vpop.f32.mrf.mxu1 }
  0xf3   :  { %v750_v20 = vmin.f32 %v686_v12, 6.0  ;;  %v782_v21 = vmin.f32 %v718_v13, 6.0  ;;  %v684_v22 = vmax.f32 %v466_v14, 0.0  ;;  %v716_v23 = vmax.f32 %v594_v15, 0.0 }
  0xf4   :  { %809 = vst [vmem:[%s1525_s3 + $0x48] sm:$0xff] %v745_v16  ;;  %841 = vst [vmem:[%s1525_s3 + $0x148] sm:$0xff] %v777_v17  ;;  %v477_v24 = vadd.f32 %v1000_v18, %v1264_v38  ;;  %v605_v25 = vadd.f32 %v1032_v19, %v1264_v38  ;;  %v468_v26 = vpop.f32.mrf.mxu0  ;;  %v596_v27 = vpop.f32.mrf.mxu1 }
  0xf5   :  { %814 = vst [vmem:[%s1525_s3 + $0x70] sm:$0xff] %v750_v20  ;;  %846 = vst [vmem:[%s1525_s3 + $0x170] sm:$0xff] %v782_v21  ;;  %v748_v28 = vmin.f32 %v684_v22, 6.0  ;;  %v780_v29 = vmin.f32 %v716_v23, 6.0  ;;  %v469_v30 = vadd.f32 %v1264_v38, %v468_v26  ;;  %v597_v31 = vadd.f32 %v1264_v38, %v596_v27 }
  0xf6   :  { %v687_v32 = vmax.f32 %v477_v24, 0.0  ;;  %v719_v33 = vmax.f32 %v605_v25, 0.0  ;;  %v1003_v34 = vpop.f32.mrf.mxu0  ;;  %v1035_v35 = vpop.f32.mrf.mxu1 }
  0xf7   :  { %812 = vst [vmem:[%s1525_s3 + $0x60] sm:$0xff] %v748_v28  ;;  %844 = vst [vmem:[%s1525_s3 + $0x160] sm:$0xff] %v780_v29  ;;  %v685_v36 = vmax.f32 %v469_v30, 0.0  ;;  %v717_v37 = vmax.f32 %v597_v31, 0.0  ;;  %v490_v39 = vadd.f32 %v1003_v34, %v1264_v38  ;;  %v618_v40 = vadd.f32 %v1035_v35, %v1264_v38 }
  0xf8   :  { %v751_v41 = vmin.f32 %v687_v32, 6.0  ;;  %v783_v42 = vmin.f32 %v719_v33, 6.0  ;;  %v481_v43 = vpop.f32.mrf.mxu0  ;;  %v609_v44 = vpop.f32.mrf.mxu1 }
  0xf9   :  { %v749_v45 = vmin.f32 %v685_v36, 6.0  ;;  %v781_v46 = vmin.f32 %v717_v37, 6.0  ;;  %v690_v47 = vmax.f32 %v490_v39, 0.0  ;;  %v722_v48 = vmax.f32 %v618_v40, 0.0 }
  0xfa   :  { %815 = vst [vmem:[%s1525_s3 + $0x78] sm:$0xff] %v751_v41  ;;  %847 = vst [vmem:[%s1525_s3 + $0x178] sm:$0xff] %v783_v42  ;;  %v482_v49 = vadd.f32 %v1264_v38, %v481_v43  ;;  %v610_v50 = vadd.f32 %v1264_v38, %v609_v44  ;;  %v1004_v51 = vpop.f32.mrf.mxu0  ;;  %v1036_v52 = vpop.f32.mrf.mxu1 }
  0xfb   :  { %813 = vst [vmem:[%s1525_s3 + $0x68] sm:$0xff] %v749_v45  ;;  %845 = vst [vmem:[%s1525_s3 + $0x168] sm:$0xff] %v781_v46  ;;  %v754_v53 = vmin.f32 %v690_v47, 6.0  ;;  %v786_v54 = vmin.f32 %v722_v48, 6.0  ;;  %v493_v55 = vadd.f32 %v1004_v51, %v1264_v38  ;;  %v621_v56 = vadd.f32 %v1036_v52, %v1264_v38 }
  0xfc   :  { %v688_v57 = vmax.f32 %v482_v49, 0.0  ;;  %v720_v58 = vmax.f32 %v610_v50, 0.0  ;;  %v484_v59 = vpop.f32.mrf.mxu0  ;;  %v612_v60 = vpop.f32.mrf.mxu1 }
  0xfd   :  { %818 = vst [vmem:[%s1525_s3 + $0x90] sm:$0xff] %v754_v53  ;;  %850 = vst [vmem:[%s1525_s3 + $0x190] sm:$0xff] %v786_v54  ;;  %v691_v61 = vmax.f32 %v493_v55, 0.0  ;;  %v723_v62 = vmax.f32 %v621_v56, 0.0  ;;  %v485_v63 = vadd.f32 %v1264_v38, %v484_v59  ;;  %v613_v0 = vadd.f32 %v1264_v38, %v612_v60 }
  0xfe   :  { %v752_v1 = vmin.f32 %v688_v57, 6.0  ;;  %v784_v2 = vmin.f32 %v720_v58, 6.0  ;;  %v1007_v3 = vpop.f32.mrf.mxu0  ;;  %v1039_v4 = vpop.f32.mrf.mxu1 }
  0xff   :  { %v755_v5 = vmin.f32 %v691_v61, 6.0  ;;  %v787_v6 = vmin.f32 %v723_v62, 6.0  ;;  %v689_v7 = vmax.f32 %v485_v63, 0.0  ;;  %v721_v8 = vmax.f32 %v613_v0, 0.0 }
 0x100   :  { %816 = vst [vmem:[%s1525_s3 + $0x80] sm:$0xff] %v752_v1  ;;  %848 = vst [vmem:[%s1525_s3 + $0x180] sm:$0xff] %v784_v2  ;;  %v506_v9 = vadd.f32 %v1007_v3, %v1264_v38  ;;  %v634_v10 = vadd.f32 %v1039_v4, %v1264_v38  ;;  %v497_v11 = vpop.f32.mrf.mxu0  ;;  %v625_v12 = vpop.f32.mrf.mxu1 }
 0x101   :  { %819 = vst [vmem:[%s1525_s3 + $0x98] sm:$0xff] %v755_v5  ;;  %851 = vst [vmem:[%s1525_s3 + $0x198] sm:$0xff] %v787_v6  ;;  %v753_v13 = vmin.f32 %v689_v7, 6.0  ;;  %v785_v14 = vmin.f32 %v721_v8, 6.0  ;;  %v498_v15 = vadd.f32 %v1264_v38, %v497_v11  ;;  %v626_v16 = vadd.f32 %v1264_v38, %v625_v12 }
 0x102   :  { %v694_v17 = vmax.f32 %v506_v9, 0.0  ;;  %v726_v18 = vmax.f32 %v634_v10, 0.0  ;;  %v1008_v19 = vpop.f32.mrf.mxu0  ;;  %v1040_v20 = vpop.f32.mrf.mxu1 }
 0x103   :  { %817 = vst [vmem:[%s1525_s3 + $0x88] sm:$0xff] %v753_v13  ;;  %849 = vst [vmem:[%s1525_s3 + $0x188] sm:$0xff] %v785_v14  ;;  %v692_v21 = vmax.f32 %v498_v15, 0.0  ;;  %v724_v22 = vmax.f32 %v626_v16, 0.0  ;;  %v509_v23 = vadd.f32 %v1008_v19, %v1264_v38  ;;  %v637_v24 = vadd.f32 %v1040_v20, %v1264_v38 }
 0x104   :  { %v758_v25 = vmin.f32 %v694_v17, 6.0  ;;  %v790_v26 = vmin.f32 %v726_v18, 6.0  ;;  %v500_v27 = vpop.f32.mrf.mxu0  ;;  %v628_v28 = vpop.f32.mrf.mxu1 }
 0x105   :  { %v756_v29 = vmin.f32 %v692_v21, 6.0  ;;  %v788_v30 = vmin.f32 %v724_v22, 6.0  ;;  %v695_v31 = vmax.f32 %v509_v23, 0.0  ;;  %v727_v32 = vmax.f32 %v637_v24, 0.0 }
 0x106   :  { %822 = vst [vmem:[%s1525_s3 + $0xb0] sm:$0xff] %v758_v25  ;;  %854 = vst [vmem:[%s1525_s3 + $0x1b0] sm:$0xff] %v790_v26  ;;  %v501_v33 = vadd.f32 %v1264_v38, %v500_v27  ;;  %v629_v34 = vadd.f32 %v1264_v38, %v628_v28  ;;  %v1011_v35 = vpop.f32.mrf.mxu0  ;;  %v1043_v36 = vpop.f32.mrf.mxu1 }
 0x107   :  { %820 = vst [vmem:[%s1525_s3 + $0xa0] sm:$0xff] %v756_v29  ;;  %852 = vst [vmem:[%s1525_s3 + $0x1a0] sm:$0xff] %v788_v30  ;;  %v759_v37 = vmin.f32 %v695_v31, 6.0  ;;  %v791_v39 = vmin.f32 %v727_v32, 6.0  ;;  %v522_v40 = vadd.f32 %v1011_v35, %v1264_v38  ;;  %v650_v41 = vadd.f32 %v1043_v36, %v1264_v38 }
 0x108   :  { %v693_v42 = vmax.f32 %v501_v33, 0.0  ;;  %v725_v43 = vmax.f32 %v629_v34, 0.0  ;;  %v513_v44 = vpop.f32.mrf.mxu0  ;;  %v641_v45 = vpop.f32.mrf.mxu1 }
 0x109   :  { %823 = vst [vmem:[%s1525_s3 + $0xb8] sm:$0xff] %v759_v37  ;;  %855 = vst [vmem:[%s1525_s3 + $0x1b8] sm:$0xff] %v791_v39  ;;  %v698_v46 = vmax.f32 %v522_v40, 0.0  ;;  %v730_v47 = vmax.f32 %v650_v41, 0.0  ;;  %v514_v48 = vadd.f32 %v1264_v38, %v513_v44  ;;  %v642_v49 = vadd.f32 %v1264_v38, %v641_v45 }
 0x10a   :  { %v757_v50 = vmin.f32 %v693_v42, 6.0  ;;  %v789_v51 = vmin.f32 %v725_v43, 6.0  ;;  %v1012_v52 = vpop.f32.mrf.mxu0  ;;  %v1044_v53 = vpop.f32.mrf.mxu1 }
 0x10b   :  { %v762_v54 = vmin.f32 %v698_v46, 6.0  ;;  %v794_v55 = vmin.f32 %v730_v47, 6.0  ;;  %v696_v56 = vmax.f32 %v514_v48, 0.0  ;;  %v728_v57 = vmax.f32 %v642_v49, 0.0 }
 0x10c   :  { %821 = vst [vmem:[%s1525_s3 + $0xa8] sm:$0xff] %v757_v50  ;;  %853 = vst [vmem:[%s1525_s3 + $0x1a8] sm:$0xff] %v789_v51  ;;  %v525_v58 = vadd.f32 %v1012_v52, %v1264_v38  ;;  %v653_v59 = vadd.f32 %v1044_v53, %v1264_v38  ;;  %v516_v60 = vpop.f32.mrf.mxu0  ;;  %v644_v61 = vpop.f32.mrf.mxu1 }
 0x10d   :  { %826 = vst [vmem:[%s1525_s3 + $0xd0] sm:$0xff] %v762_v54  ;;  %858 = vst [vmem:[%s1525_s3 + $0x1d0] sm:$0xff] %v794_v55  ;;  %v760_v62 = vmin.f32 %v696_v56, 6.0  ;;  %v792_v63 = vmin.f32 %v728_v57, 6.0  ;;  %v517_v0 = vadd.f32 %v1264_v38, %v516_v60  ;;  %v645_v1 = vadd.f32 %v1264_v38, %v644_v61 }
 0x10e   :  { %v699_v2 = vmax.f32 %v525_v58, 0.0  ;;  %v731_v3 = vmax.f32 %v653_v59, 0.0  ;;  %v1015_v4 = vpop.f32.mrf.mxu0  ;;  %v1047_v5 = vpop.f32.mrf.mxu1 }
 0x10f   :  { %824 = vst [vmem:[%s1525_s3 + $0xc0] sm:$0xff] %v760_v62  ;;  %856 = vst [vmem:[%s1525_s3 + $0x1c0] sm:$0xff] %v792_v63  ;;  %v697_v6 = vmax.f32 %v517_v0, 0.0  ;;  %v729_v7 = vmax.f32 %v645_v1, 0.0  ;;  %v538_v8 = vadd.f32 %v1015_v4, %v1264_v38  ;;  %v666_v9 = vadd.f32 %v1047_v5, %v1264_v38 }
 0x110   :  { %v763_v10 = vmin.f32 %v699_v2, 6.0  ;;  %v795_v11 = vmin.f32 %v731_v3, 6.0  ;;  %v529_v12 = vpop.f32.mrf.mxu0  ;;  %v657_v13 = vpop.f32.mrf.mxu1 }
 0x111   :  { %v761_v14 = vmin.f32 %v697_v6, 6.0  ;;  %v793_v15 = vmin.f32 %v729_v7, 6.0  ;;  %v702_v16 = vmax.f32 %v538_v8, 0.0  ;;  %v734_v17 = vmax.f32 %v666_v9, 0.0 }
 0x112   :  { %827 = vst [vmem:[%s1525_s3 + $0xd8] sm:$0xff] %v763_v10  ;;  %859 = vst [vmem:[%s1525_s3 + $0x1d8] sm:$0xff] %v795_v11  ;;  %v530_v18 = vadd.f32 %v1264_v38, %v529_v12  ;;  %v658_v19 = vadd.f32 %v1264_v38, %v657_v13  ;;  %v1016_v20 = vpop.f32.mrf.mxu0  ;;  %v1048_v21 = vpop.f32.mrf.mxu1 }
 0x113   :  { %825 = vst [vmem:[%s1525_s3 + $0xc8] sm:$0xff] %v761_v14  ;;  %857 = vst [vmem:[%s1525_s3 + $0x1c8] sm:$0xff] %v793_v15  ;;  %v766_v22 = vmin.f32 %v702_v16, 6.0  ;;  %v798_v23 = vmin.f32 %v734_v17, 6.0  ;;  %v541_v24 = vadd.f32 %v1016_v20, %v1264_v38  ;;  %v669_v25 = vadd.f32 %v1048_v21, %v1264_v38 }
 0x114   :  { %v700_v26 = vmax.f32 %v530_v18, 0.0  ;;  %v732_v27 = vmax.f32 %v658_v19, 0.0  ;;  %v532_v28 = vpop.f32.mrf.mxu0  ;;  %v660_v29 = vpop.f32.mrf.mxu1 }
 0x115   :  { %830 = vst [vmem:[%s1525_s3 + $0xf0] sm:$0xff] %v766_v22  ;;  %862 = vst [vmem:[%s1525_s3 + $0x1f0] sm:$0xff] %v798_v23  ;;  %v703_v30 = vmax.f32 %v541_v24, 0.0  ;;  %v735_v31 = vmax.f32 %v669_v25, 0.0  ;;  %v533_v32 = vadd.f32 %v1264_v38, %v532_v28  ;;  %v661_v33 = vadd.f32 %v1264_v38, %v660_v29 }
 0x116   :  { %v764_v34 = vmin.f32 %v700_v26, 6.0  ;;  %v796_v35 = vmin.f32 %v732_v27, 6.0 }
 0x117   :  { %v767_v36 = vmin.f32 %v703_v30, 6.0  ;;  %v799_v37 = vmin.f32 %v735_v31, 6.0  ;;  %v701_v39 = vmax.f32 %v533_v32, 0.0  ;;  %v733_v40 = vmax.f32 %v661_v33, 0.0 }
 0x118   :  { %828 = vst [vmem:[%s1525_s3 + $0xe0] sm:$0xff] %v764_v34  ;;  %860 = vst [vmem:[%s1525_s3 + $0x1e0] sm:$0xff] %v796_v35 }
 0x119   :  { %831 = vst [vmem:[%s1525_s3 + $0xf8] sm:$0xff] %v767_v36  ;;  %863 = vst [vmem:[%s1525_s3 + $0x1f8] sm:$0xff] %v799_v37  ;;  %v765_v38 = vmin.f32 %v701_v39, 6.0  ;;  %v797_v41 = vmin.f32 %v733_v40, 6.0 }
 0x11b   :  { %829 = vst [vmem:[%s1525_s3 + $0xe8] sm:$0xff] %v765_v38  ;;  %861 = vst [vmem:[%s1525_s3 + $0x1e8] sm:$0xff] %v797_v41 }

</bundles_post_ra>
